<compile_context>
chip_gen: v5e
topology: v5e:2x2
jax: 0.10.0
libtpu: 0.0.40
codegen_flags: <defaults>
</compile_context>

<pallas_src>
import functools

import jax
import jax.numpy as jnp
from jax import lax
from jax.experimental import pallas as pl
from jax.experimental.pallas import tpu as pltpu

CP = 128  # lane-dense padded channel width (multiple of 128)


# ---------------------------------------------------------------------------
# Fused Pallas kernel: all gcn_glu layers + middle-node slice + max-over-layers
# ---------------------------------------------------------------------------
def fused_stsgcm_kernel(x_ref, a_ref, w_ref, b_ref, o_ref, *,
                        num_layers, num_nodes, batch_block):
    # x_ref : (Vp, bb*CP)   bf16  activations for this batch block, node-major,
    #                             channel-padded; doubles as the RHS of A @ x.
    # a_ref : (Vp, Vp)      bf16  zero-padded adjacency (resident across grid).
    # w_ref : (G, CP, 2*CP) bf16  fused GLU weights [W1 | W2] per layer.
    # b_ref : (G, 1, 2*CP)  f32   fused GLU biases  [b1 | b2] per layer.
    # o_ref : (N, bb*CP)    f32   max over layers of the middle-time-step nodes.
    bb = batch_block
    n = num_nodes
    a = a_ref[...]
    x0 = x_ref[...]
    vp = a.shape[0]
    acc0 = jnp.full((vp, bb * CP), -jnp.inf, jnp.float32)

    def layer(g, carry):
        x_bf, acc = carry
        # Adjacency matmul with the batch folded into the MXU N dimension.
        ax = jnp.dot(a, x_bf, preferred_element_type=jnp.float32)      # (Vp, bb*CP) f32
        ax_bf = ax.astype(jnp.bfloat16)
        w12 = w_ref[g]                                                 # (CP, 2*CP) bf16
        b12 = b_ref[g]                                                 # (1, 2*CP)  f32
        glu = []
        for b in range(bb):  # small static loop; all slices are 128-lane aligned
            axb = ax_bf[:, b * CP:(b + 1) * CP]                        # (Vp, CP)
            h = jnp.dot(axb, w12,
                        preferred_element_type=jnp.float32) + b12      # (Vp, 2*CP) f32
            gate = 1.0 / (1.0 + jnp.exp(-h[:, CP:]))                   # sigmoid (EUP)
            glu.append(h[:, :CP] * gate)                               # GLU value*gate
        new_x = glu[0] if bb == 1 else jnp.concatenate(glu, axis=1)    # (Vp, bb*CP) f32
        # Running max over layers on the full slab (slice-of-max == max-of-slices).
        return new_x.astype(jnp.bfloat16), jnp.maximum(acc, new_x)

    _, acc = lax.fori_loop(0, num_layers, layer, (x0, acc0), unroll=True)

    # Middle-time-step nodes [N, 2N).  With num_nodes a multiple of 8 this is a
    # free sublane-aligned view; otherwise it is one relayout copy per grid step.
    o_ref[...] = acc[n:2 * n, :].astype(o_ref.dtype)


# ---------------------------------------------------------------------------
# Wrapper
# ---------------------------------------------------------------------------
def stsgcm_forward(x, A, params, num_nodes, *, batch_block=None):
    """Pallas implementation of stsgcm.forward.

    x: (3*num_nodes, B, num_of_features)   -- same layout the PyTorch module takes
    A: (3*num_nodes, 3*num_nodes)
    params: list of (W, bias, c_out) per gcn_glu layer, W: (c_in, 2*c_out), bias: (1, 2*c_out)
    returns: (1, num_nodes, B, c_out)      -- same as the PyTorch module
    """
    V, B, Cin = x.shape
    N = num_nodes
    G = len(params)
    c_out = params[0][2]
    assert all(p[2] == c_out for p in params)
    assert Cin <= CP and c_out <= CP and 2 * N <= V

    bb = batch_block if batch_block is not None else min(B, 2)
    Bp = (B + bb - 1) // bb * bb          # pad batch to a multiple of the block
    Vp = (V + 7) // 8 * 8                 # pad nodes to a sublane multiple

    # Zero padding: padded channels stay exactly zero through every layer because
    # the padded W columns AND padded bias entries are zero; padded node rows never
    # feed back (padded A columns are zero) and never reach the output slice.
    x_pad = jnp.zeros((Vp, Bp, CP), jnp.float32).at[:V, :B, :Cin].set(x)
    x_flat = x_pad.astype(jnp.bfloat16).reshape(Vp, Bp * CP)   # row-major (v, b*CP + c)
    A_pad = jnp.zeros((Vp, Vp), jnp.float32).at[:V, :V].set(A).astype(jnp.bfloat16)

    # Fused GLU weights [W1 | W2] and biases, zero-padded to 128 / 256 lanes.
    Ws, Bs = [], []
    for (W, bias, co) in params:
        ci = W.shape[0]
        w12 = jnp.zeros((CP, 2 * CP), jnp.float32)
        w12 = w12.at[:ci, :co].set(W[:, :co]).at[:ci, CP:CP + co].set(W[:, co:])
        b12 = jnp.zeros((1, 2 * CP), jnp.float32)
        b12 = b12.at[:, :co].set(bias[:, :co]).at[:, CP:CP + co].set(bias[:, co:])
        Ws.append(w12.astype(jnp.bfloat16))
        Bs.append(b12)
    W12a = jnp.stack(Ws)    # (G, CP, 2*CP) bf16
    B12a = jnp.stack(Bs)    # (G, 1, 2*CP)  f32

    kernel = functools.partial(fused_stsgcm_kernel, num_layers=G,
                               num_nodes=N, batch_block=bb)
    grid = (Bp // bb,)
    flops = G * (2 * Vp * Vp * Bp * CP + 2 * Vp * Bp * CP * (2 * CP))
    bytes_accessed = (x_flat.size * 2 + A_pad.size * 2 + W12a.size * 2
                      + B12a.size * 4 + N * Bp * CP * 4)

    out_flat = pl.pallas_call(
        kernel,
        out_shape=jax.ShapeDtypeStruct((N, Bp * CP), jnp.float32),
        grid=grid,
        in_specs=[
            pl.BlockSpec((Vp, bb * CP), lambda i: (0, i)),        # x: blocked over batch
            pl.BlockSpec((Vp, Vp), lambda i: (0, 0)),             # A: resident
            pl.BlockSpec((G, CP, 2 * CP), lambda i: (0, 0, 0)),   # weights: resident
            pl.BlockSpec((G, 1, 2 * CP), lambda i: (0, 0, 0)),    # biases: resident
        ],
        out_specs=pl.BlockSpec((N, bb * CP), lambda i: (0, i)),
        compiler_params=pltpu.CompilerParams(
            dimension_semantics=("parallel",),
            vmem_limit_bytes=48 * 1024 * 1024),
        cost_estimate=pl.CostEstimate(
            flops=flops,
            transcendentals=G * Vp * Bp * CP,
            bytes_accessed=bytes_accessed),
    )(x_flat, A_pad, W12a, B12a)

    out = out_flat.reshape(N, Bp, CP)[:, :B, :c_out]               # (N, B, c_out)
    return out[None]                                               # (1, N, B, c_out)


# ---------------------------------------------------------------------------
# Pure-JAX f32 reference (mirrors the PyTorch semantics) for the correctness check
# ---------------------------------------------------------------------------
def stsgcm_reference(x, A, params, num_nodes):
    outs = []
    for (W, bias, c_out) in params:
        ax = jnp.einsum('vn,nbc->vbc', A, x)             # nconv: 'vn,bfnt->bfvt' (t=1)
        h = jnp.einsum('vbc,co->vbo', ax, W) + bias[0]   # 1x1 conv over channels
        h1, h2 = h[..., :c_out], h[..., c_out:]
        x = h1 * jax.nn.sigmoid(h2)                      # GLU; back to (V, B, c_out)
        outs.append(x[num_nodes:2 * num_nodes])          # (N, B, c_out)
    return jnp.max(jnp.stack(outs, axis=0), axis=0)[None]


# ---------------------------------------------------------------------------
# Main
# ---------------------------------------------------------------------------
if __name__ == "__main__":
    num_nodes = 8
    gcn_num = 3
    num_of_features = 4
    output_features_num = 16
    batch = 4
    V = 3 * num_nodes  # STSGCN localized graph spans 3 consecutive time steps

    key = jax.random.PRNGKey(0)
    k_x, k_a, k_p = jax.random.split(key, 3)

    x = jax.random.normal(k_x, (V, batch, num_of_features), dtype=jnp.float32)
    A = jax.random.normal(k_a, (V, V), dtype=jnp.float32) * 0.1

    # Deterministic parameter init for each gcn_glu layer (Conv2d 1x1: weight + bias).
    params = []
    c_in = num_of_features
    for i in range(gcn_num):
        k_p, k_w, k_b = jax.random.split(k_p, 3)
        W = jax.random.normal(k_w, (c_in, 2 * output_features_num), dtype=jnp.float32) * 0.1
        b = jax.random.normal(k_b, (1, 2 * output_features_num), dtype=jnp.float32) * 0.1
        params.append((W, b, output_features_num))
        c_in = output_features_num

    out = jax.block_until_ready(stsgcm_forward(x, A, params, num_nodes, batch_block=2))
    ref = jax.block_until_ready(stsgcm_reference(x, A, params, num_nodes))

    assert out.shape == (1, num_nodes, batch, output_features_num), out.shape
    # bf16 matmul operands with f32 accumulation -> loosened tolerances vs f32 ref.
    assert jnp.allclose(out, ref, rtol=5e-2, atol=2e-2), "mismatch vs reference"

    print("KERNEL_OK")
</pallas_src>

<mosaic_0001>
module attributes {stable_mosaic.version = 11 : i64} {
  func.func @fused_stsgcm_kernel(%arg0: i32, %arg1: memref<24x256xbf16, #tpu.memory_space<vmem>>, %arg2: memref<24x24xbf16, #tpu.memory_space<vmem>>, %arg3: memref<3x128x256xbf16, #tpu.memory_space<vmem>>, %arg4: memref<3x1x256xf32, #tpu.memory_space<vmem>>, %arg5: memref<8x256xf32, #tpu.memory_space<vmem>>) attributes {dimension_semantics = [#tpu.dimension_semantics<parallel>], iteration_bounds = array<i64: 2>, scalar_prefetch = 0 : i64, scratch_operands = 0 : i64, tpu.core_type = #tpu.core_type<tc>, window_params = [{transform_indices = @transform_0, window_bounds = array<i64: 24, 256>}, {pipeline_mode = #tpu.pipeline_mode<synchronous>, transform_indices = @transform_1, window_bounds = array<i64: 24, 24>}, {pipeline_mode = #tpu.pipeline_mode<synchronous>, transform_indices = @transform_2, window_bounds = array<i64: 3, 128, 256>}, {pipeline_mode = #tpu.pipeline_mode<synchronous>, transform_indices = @transform_3, window_bounds = array<i64: 3, 1, 256>}, {transform_indices = @transform_4, window_bounds = array<i64: 8, 256>}]} {
    %c0 = arith.constant 0 : index
    %c0_0 = arith.constant 0 : index
    %0 = vector.load %arg2[%c0, %c0_0] : memref<24x24xbf16, #tpu.memory_space<vmem>>, vector<24x24xbf16>
    %c0_1 = arith.constant 0 : index
    %c0_2 = arith.constant 0 : index
    %1 = vector.load %arg1[%c0_1, %c0_2] : memref<24x256xbf16, #tpu.memory_space<vmem>>, vector<24x256xbf16>
    %cst = arith.constant 0xFF800000 : f32
    %2 = vector.broadcast %cst : f32 to vector<24x256xf32>
    %c0_i32 = arith.constant 0 : i32
    %cst_3 = arith.constant dense<0.000000e+00> : vector<24x256xf32>
    %3 = tpu.matmul %0, %1, %cst_3 {dimension_numbers = #tpu.dot_dimension_numbers<[1], [0], [0], [1], [0, 0, 1, 1], [], []>} : vector<24x24xbf16>, vector<24x256xbf16>, vector<24x256xf32> -> vector<24x256xf32>
    %4 = arith.truncf %3 : vector<24x256xf32> to vector<24x256xbf16>
    %5 = arith.index_cast %c0_i32 : i32 to index
    %c0_4 = arith.constant 0 : index
    %c0_5 = arith.constant 0 : index
    %6 = vector.load %arg3[%5, %c0_4, %c0_5] : memref<3x128x256xbf16, #tpu.memory_space<vmem>>, vector<1x128x256xbf16>
    %7 = vector.shape_cast %6 : vector<1x128x256xbf16> to vector<128x256xbf16>
    %8 = arith.index_cast %c0_i32 : i32 to index
    %c0_6 = arith.constant 0 : index
    %c0_7 = arith.constant 0 : index
    %9 = vector.load %arg4[%8, %c0_6, %c0_7] : memref<3x1x256xf32, #tpu.memory_space<vmem>>, vector<1x1x256xf32>
    %10 = vector.shape_cast %9 : vector<1x1x256xf32> to vector<1x256xf32>
    %11 = vector.extract_strided_slice %4 {offsets = [0, 0], sizes = [24, 128], strides = [1, 1]} : vector<24x256xbf16> to vector<24x128xbf16>
    %cst_8 = arith.constant dense<0.000000e+00> : vector<24x256xf32>
    %12 = tpu.matmul %11, %7, %cst_8 {dimension_numbers = #tpu.dot_dimension_numbers<[1], [0], [0], [1], [0, 0, 1, 1], [], []>} : vector<24x128xbf16>, vector<128x256xbf16>, vector<24x256xf32> -> vector<24x256xf32>
    %13 = vector.broadcast %10 : vector<1x256xf32> to vector<24x256xf32>
    %14 = arith.addf %12, %13 : vector<24x256xf32>
    %15 = vector.extract_strided_slice %14 {offsets = [0, 128], sizes = [24, 128], strides = [1, 1]} : vector<24x256xf32> to vector<24x128xf32>
    %cst_9 = arith.constant 0.000000e+00 : f32
    %16 = vector.broadcast %cst_9 : f32 to vector<24x128xf32>
    %17 = arith.subf %16, %15 : vector<24x128xf32>
    %18 = math.exp %17 : vector<24x128xf32>
    %cst_10 = arith.constant 1.000000e+00 : f32
    %19 = vector.broadcast %cst_10 : f32 to vector<24x128xf32>
    %20 = arith.addf %19, %18 : vector<24x128xf32>
    %cst_11 = arith.constant 1.000000e+00 : f32
    %21 = vector.broadcast %cst_11 : f32 to vector<24x128xf32>
    %22 = arith.divf %21, %20 : vector<24x128xf32>
    %23 = vector.extract_strided_slice %14 {offsets = [0, 0], sizes = [24, 128], strides = [1, 1]} : vector<24x256xf32> to vector<24x128xf32>
    %24 = arith.mulf %23, %22 : vector<24x128xf32>
    %25 = vector.extract_strided_slice %4 {offsets = [0, 128], sizes = [24, 128], strides = [1, 1]} : vector<24x256xbf16> to vector<24x128xbf16>
    %cst_12 = arith.constant dense<0.000000e+00> : vector<24x256xf32>
    %26 = tpu.matmul %25, %7, %cst_12 {dimension_numbers = #tpu.dot_dimension_numbers<[1], [0], [0], [1], [0, 0, 1, 1], [], []>} : vector<24x128xbf16>, vector<128x256xbf16>, vector<24x256xf32> -> vector<24x256xf32>
    %27 = vector.broadcast %10 : vector<1x256xf32> to vector<24x256xf32>
    %28 = arith.addf %26, %27 : vector<24x256xf32>
    %29 = vector.extract_strided_slice %28 {offsets = [0, 128], sizes = [24, 128], strides = [1, 1]} : vector<24x256xf32> to vector<24x128xf32>
    %cst_13 = arith.constant 0.000000e+00 : f32
    %30 = vector.broadcast %cst_13 : f32 to vector<24x128xf32>
    %31 = arith.subf %30, %29 : vector<24x128xf32>
    %32 = math.exp %31 : vector<24x128xf32>
    %cst_14 = arith.constant 1.000000e+00 : f32
    %33 = vector.broadcast %cst_14 : f32 to vector<24x128xf32>
    %34 = arith.addf %33, %32 : vector<24x128xf32>
    %cst_15 = arith.constant 1.000000e+00 : f32
    %35 = vector.broadcast %cst_15 : f32 to vector<24x128xf32>
    %36 = arith.divf %35, %34 : vector<24x128xf32>
    %37 = vector.extract_strided_slice %28 {offsets = [0, 0], sizes = [24, 128], strides = [1, 1]} : vector<24x256xf32> to vector<24x128xf32>
    %38 = arith.mulf %37, %36 : vector<24x128xf32>
    %39 = tpu.concatenate %24, %38 in 1 : vector<24x128xf32>, vector<24x128xf32> -> vector<24x256xf32>
    %40 = arith.truncf %39 : vector<24x256xf32> to vector<24x256xbf16>
    %41 = arith.maximumf %2, %39 : vector<24x256xf32>
    %c1_i32 = arith.constant 1 : i32
    %cst_16 = arith.constant dense<0.000000e+00> : vector<24x256xf32>
    %42 = tpu.matmul %0, %40, %cst_16 {dimension_numbers = #tpu.dot_dimension_numbers<[1], [0], [0], [1], [0, 0, 1, 1], [], []>} : vector<24x24xbf16>, vector<24x256xbf16>, vector<24x256xf32> -> vector<24x256xf32>
    %43 = arith.truncf %42 : vector<24x256xf32> to vector<24x256xbf16>
    %44 = arith.index_cast %c1_i32 : i32 to index
    %c0_17 = arith.constant 0 : index
    %c0_18 = arith.constant 0 : index
    %45 = vector.load %arg3[%44, %c0_17, %c0_18] : memref<3x128x256xbf16, #tpu.memory_space<vmem>>, vector<1x128x256xbf16>
    %46 = vector.shape_cast %45 : vector<1x128x256xbf16> to vector<128x256xbf16>
    %47 = arith.index_cast %c1_i32 : i32 to index
    %c0_19 = arith.constant 0 : index
    %c0_20 = arith.constant 0 : index
    %48 = vector.load %arg4[%47, %c0_19, %c0_20] : memref<3x1x256xf32, #tpu.memory_space<vmem>>, vector<1x1x256xf32>
    %49 = vector.shape_cast %48 : vector<1x1x256xf32> to vector<1x256xf32>
    %50 = vector.extract_strided_slice %43 {offsets = [0, 0], sizes = [24, 128], strides = [1, 1]} : vector<24x256xbf16> to vector<24x128xbf16>
    %cst_21 = arith.constant dense<0.000000e+00> : vector<24x256xf32>
    %51 = tpu.matmul %50, %46, %cst_21 {dimension_numbers = #tpu.dot_dimension_numbers<[1], [0], [0], [1], [0, 0, 1, 1], [], []>} : vector<24x128xbf16>, vector<128x256xbf16>, vector<24x256xf32> -> vector<24x256xf32>
    %52 = vector.broadcast %49 : vector<1x256xf32> to vector<24x256xf32>
    %53 = arith.addf %51, %52 : vector<24x256xf32>
    %54 = vector.extract_strided_slice %53 {offsets = [0, 128], sizes = [24, 128], strides = [1, 1]} : vector<24x256xf32> to vector<24x128xf32>
    %cst_22 = arith.constant 0.000000e+00 : f32
    %55 = vector.broadcast %cst_22 : f32 to vector<24x128xf32>
    %56 = arith.subf %55, %54 : vector<24x128xf32>
    %57 = math.exp %56 : vector<24x128xf32>
    %cst_23 = arith.constant 1.000000e+00 : f32
    %58 = vector.broadcast %cst_23 : f32 to vector<24x128xf32>
    %59 = arith.addf %58, %57 : vector<24x128xf32>
    %cst_24 = arith.constant 1.000000e+00 : f32
    %60 = vector.broadcast %cst_24 : f32 to vector<24x128xf32>
    %61 = arith.divf %60, %59 : vector<24x128xf32>
    %62 = vector.extract_strided_slice %53 {offsets = [0, 0], sizes = [24, 128], strides = [1, 1]} : vector<24x256xf32> to vector<24x128xf32>
    %63 = arith.mulf %62, %61 : vector<24x128xf32>
    %64 = vector.extract_strided_slice %43 {offsets = [0, 128], sizes = [24, 128], strides = [1, 1]} : vector<24x256xbf16> to vector<24x128xbf16>
    %cst_25 = arith.constant dense<0.000000e+00> : vector<24x256xf32>
    %65 = tpu.matmul %64, %46, %cst_25 {dimension_numbers = #tpu.dot_dimension_numbers<[1], [0], [0], [1], [0, 0, 1, 1], [], []>} : vector<24x128xbf16>, vector<128x256xbf16>, vector<24x256xf32> -> vector<24x256xf32>
    %66 = vector.broadcast %49 : vector<1x256xf32> to vector<24x256xf32>
    %67 = arith.addf %65, %66 : vector<24x256xf32>
    %68 = vector.extract_strided_slice %67 {offsets = [0, 128], sizes = [24, 128], strides = [1, 1]} : vector<24x256xf32> to vector<24x128xf32>
    %cst_26 = arith.constant 0.000000e+00 : f32
    %69 = vector.broadcast %cst_26 : f32 to vector<24x128xf32>
    %70 = arith.subf %69, %68 : vector<24x128xf32>
    %71 = math.exp %70 : vector<24x128xf32>
    %cst_27 = arith.constant 1.000000e+00 : f32
    %72 = vector.broadcast %cst_27 : f32 to vector<24x128xf32>
    %73 = arith.addf %72, %71 : vector<24x128xf32>
    %cst_28 = arith.constant 1.000000e+00 : f32
    %74 = vector.broadcast %cst_28 : f32 to vector<24x128xf32>
    %75 = arith.divf %74, %73 : vector<24x128xf32>
    %76 = vector.extract_strided_slice %67 {offsets = [0, 0], sizes = [24, 128], strides = [1, 1]} : vector<24x256xf32> to vector<24x128xf32>
    %77 = arith.mulf %76, %75 : vector<24x128xf32>
    %78 = tpu.concatenate %63, %77 in 1 : vector<24x128xf32>, vector<24x128xf32> -> vector<24x256xf32>
    %79 = arith.truncf %78 : vector<24x256xf32> to vector<24x256xbf16>
    %80 = arith.maximumf %41, %78 : vector<24x256xf32>
    %c2_i32 = arith.constant 2 : i32
    %cst_29 = arith.constant dense<0.000000e+00> : vector<24x256xf32>
    %81 = tpu.matmul %0, %79, %cst_29 {dimension_numbers = #tpu.dot_dimension_numbers<[1], [0], [0], [1], [0, 0, 1, 1], [], []>} : vector<24x24xbf16>, vector<24x256xbf16>, vector<24x256xf32> -> vector<24x256xf32>
    %82 = arith.truncf %81 : vector<24x256xf32> to vector<24x256xbf16>
    %83 = arith.index_cast %c2_i32 : i32 to index
    %c0_30 = arith.constant 0 : index
    %c0_31 = arith.constant 0 : index
    %84 = vector.load %arg3[%83, %c0_30, %c0_31] : memref<3x128x256xbf16, #tpu.memory_space<vmem>>, vector<1x128x256xbf16>
    %85 = vector.shape_cast %84 : vector<1x128x256xbf16> to vector<128x256xbf16>
    %86 = arith.index_cast %c2_i32 : i32 to index
    %c0_32 = arith.constant 0 : index
    %c0_33 = arith.constant 0 : index
    %87 = vector.load %arg4[%86, %c0_32, %c0_33] : memref<3x1x256xf32, #tpu.memory_space<vmem>>, vector<1x1x256xf32>
    %88 = vector.shape_cast %87 : vector<1x1x256xf32> to vector<1x256xf32>
    %89 = vector.extract_strided_slice %82 {offsets = [0, 0], sizes = [24, 128], strides = [1, 1]} : vector<24x256xbf16> to vector<24x128xbf16>
    %cst_34 = arith.constant dense<0.000000e+00> : vector<24x256xf32>
    %90 = tpu.matmul %89, %85, %cst_34 {dimension_numbers = #tpu.dot_dimension_numbers<[1], [0], [0], [1], [0, 0, 1, 1], [], []>} : vector<24x128xbf16>, vector<128x256xbf16>, vector<24x256xf32> -> vector<24x256xf32>
    %91 = vector.broadcast %88 : vector<1x256xf32> to vector<24x256xf32>
    %92 = arith.addf %90, %91 : vector<24x256xf32>
    %93 = vector.extract_strided_slice %92 {offsets = [0, 128], sizes = [24, 128], strides = [1, 1]} : vector<24x256xf32> to vector<24x128xf32>
    %cst_35 = arith.constant 0.000000e+00 : f32
    %94 = vector.broadcast %cst_35 : f32 to vector<24x128xf32>
    %95 = arith.subf %94, %93 : vector<24x128xf32>
    %96 = math.exp %95 : vector<24x128xf32>
    %cst_36 = arith.constant 1.000000e+00 : f32
    %97 = vector.broadcast %cst_36 : f32 to vector<24x128xf32>
    %98 = arith.addf %97, %96 : vector<24x128xf32>
    %cst_37 = arith.constant 1.000000e+00 : f32
    %99 = vector.broadcast %cst_37 : f32 to vector<24x128xf32>
    %100 = arith.divf %99, %98 : vector<24x128xf32>
    %101 = vector.extract_strided_slice %92 {offsets = [0, 0], sizes = [24, 128], strides = [1, 1]} : vector<24x256xf32> to vector<24x128xf32>
    %102 = arith.mulf %101, %100 : vector<24x128xf32>
    %103 = vector.extract_strided_slice %82 {offsets = [0, 128], sizes = [24, 128], strides = [1, 1]} : vector<24x256xbf16> to vector<24x128xbf16>
    %cst_38 = arith.constant dense<0.000000e+00> : vector<24x256xf32>
    %104 = tpu.matmul %103, %85, %cst_38 {dimension_numbers = #tpu.dot_dimension_numbers<[1], [0], [0], [1], [0, 0, 1, 1], [], []>} : vector<24x128xbf16>, vector<128x256xbf16>, vector<24x256xf32> -> vector<24x256xf32>
    %105 = vector.broadcast %88 : vector<1x256xf32> to vector<24x256xf32>
    %106 = arith.addf %104, %105 : vector<24x256xf32>
    %107 = vector.extract_strided_slice %106 {offsets = [0, 128], sizes = [24, 128], strides = [1, 1]} : vector<24x256xf32> to vector<24x128xf32>
    %cst_39 = arith.constant 0.000000e+00 : f32
    %108 = vector.broadcast %cst_39 : f32 to vector<24x128xf32>
    %109 = arith.subf %108, %107 : vector<24x128xf32>
    %110 = math.exp %109 : vector<24x128xf32>
    %cst_40 = arith.constant 1.000000e+00 : f32
    %111 = vector.broadcast %cst_40 : f32 to vector<24x128xf32>
    %112 = arith.addf %111, %110 : vector<24x128xf32>
    %cst_41 = arith.constant 1.000000e+00 : f32
    %113 = vector.broadcast %cst_41 : f32 to vector<24x128xf32>
    %114 = arith.divf %113, %112 : vector<24x128xf32>
    %115 = vector.extract_strided_slice %106 {offsets = [0, 0], sizes = [24, 128], strides = [1, 1]} : vector<24x256xf32> to vector<24x128xf32>
    %116 = arith.mulf %115, %114 : vector<24x128xf32>
    %117 = tpu.concatenate %102, %116 in 1 : vector<24x128xf32>, vector<24x128xf32> -> vector<24x256xf32>
    %118 = arith.truncf %117 : vector<24x256xf32> to vector<24x256xbf16>
    %119 = arith.maximumf %80, %117 : vector<24x256xf32>
    %c3_i32 = arith.constant 3 : i32
    %120 = vector.extract_strided_slice %119 {offsets = [8, 0], sizes = [8, 256], strides = [1, 1]} : vector<24x256xf32> to vector<8x256xf32>
    %c0_42 = arith.constant 0 : index
    %c0_43 = arith.constant 0 : index
    %121 = vector.load %arg5[%c0_42, %c0_43] : memref<8x256xf32, #tpu.memory_space<vmem>>, vector<8x256xf32>
    tpu.vector_store %arg5[%c0_42, %c0_43], %120 {strides = array<i32>} : memref<8x256xf32, #tpu.memory_space<vmem>>, vector<8x256xf32>,
    return
  }
  func.func @transform_0(%arg0: i32) -> (i32, i32) {
    %c0_i32 = arith.constant 0 : i32
    %c0_i32_0 = arith.constant 0 : i32
    return %c0_i32, %arg0 : i32, i32
  }
  func.func @transform_1(%arg0: i32) -> (i32, i32) {
    %c0_i32 = arith.constant 0 : i32
    %c0_i32_0 = arith.constant 0 : i32
    %c0_i32_1 = arith.constant 0 : i32
    return %c0_i32, %c0_i32_0 : i32, i32
  }
  func.func @transform_2(%arg0: i32) -> (i32, i32, i32) {
    %c0_i32 = arith.constant 0 : i32
    %c0_i32_0 = arith.constant 0 : i32
    %c0_i32_1 = arith.constant 0 : i32
    %c0_i32_2 = arith.constant 0 : i32
    return %c0_i32, %c0_i32_0, %c0_i32_1 : i32, i32, i32
  }
  func.func @transform_3(%arg0: i32) -> (i32, i32, i32) {
    %c0_i32 = arith.constant 0 : i32
    %c0_i32_0 = arith.constant 0 : i32
    %c0_i32_1 = arith.constant 0 : i32
    %c0_i32_2 = arith.constant 0 : i32
    return %c0_i32, %c0_i32_0, %c0_i32_1 : i32, i32, i32
  }
  func.func @transform_4(%arg0: i32) -> (i32, i32) {
    %c0_i32 = arith.constant 0 : i32
    %c0_i32_0 = arith.constant 0 : i32
    return %c0_i32, %arg0 : i32, i32
  }
}

</mosaic_0001>

<bundles_post_ra>
// kernel: tpu_custom_call.1
= control target key start
LH: loop header
LB: loop body
LE: loop exit
PB: predicated region body
PF: predicated region fallthrough
CT: control target
= control target key end

     0   :  { %9 = vsyncpa [#allocation3], 0  ;;  %s2606_s0 = inlined_call_operand.hbm [shape: bf16[24,512], index: 0, kind: input, shape index: {}]   ;;  %s2607_s1 = inlined_call_operand.hbm [shape: bf16[24,24], index: 1, kind: input, shape index: {}]   ;;  %s2608_s2 = inlined_call_operand.hbm [shape: bf16[3,128,256], index: 2, kind: input, shape index: {}]   ;;  %s2609_s3 = inlined_call_operand.hbm [shape: f32[3,1,256], index: 3, kind: input, shape index: {}]   ;;  %s2610_s4 = inlined_call_operand.hbm [shape: f32[8,512], index: 4, kind: output, shape index: {}]  }
   0x1   :  { %11 = vsyncpa [#allocation3 + $0x1], 0 }
   0x2   :  { %12 = vsyncpa [#allocation6], 0 }
   0x3   :  { %13 = vsyncpa [#allocation9], 0 }
   0x4   :  { %14 = vsyncpa [#allocation4], 0 }
   0x5   :  { %16 = vsyncpa [#allocation4 + $0x1], 0  ;;  %s2083_s15 = smov 0   ;;  %s2085_s16 = smov 0  }
   0x6   :  { %s2087_s17 = smov 0   ;;  %s2089_s18 = smov 0  }
   0x7 LB: > { %s2104_s19 = sadd.s32 4294967295, %s2046_s18   ;;  %s1422_s20 = sadd.s32 4294967294, %s2046_s18   ;;  %s2046_s18 = sphi %s2089_s18, %s2655_s18   ;;  %s2042_s17 = sphi %s2087_s17, %s2654_s17   ;;  %s2038_s16 = sphi %s2085_s16, %s2653_s16   ;;  %s2034_s15 = sphi %s2083_s15, %s2652_s15  }
   0x8   : > { %p42_p0 = scmp.ne.s32.totalorder %s2038_s16, %s2034_s15  ;;  %p43_p1 = scmp.eq.s32.totalorder %s2104_s19, 0 }
   0x9   : > { %p129_p2 = scmp.eq.s32.totalorder %s2104_s19, 1  ;;  %p135_p3 = scmp.eq.s32.totalorder %s1422_s20, 1 }
   0xa   : > { %p2113_p4 = por %p43_p1, %p42_p0  ;;  %p1423_p5 = scmp.ge.s32.totalorder %s2046_s18, 1 }
   0xb   : > { %p2118_p6 = por %p135_p3, %p42_p0  ;;  %p142_p7 = scmp.lt.s32.totalorder %s2046_s18, 3 }
   0xc   : > { %s153_s25 = sshll.u32 %s2607_s1, 4  ;;  %s2048_s27 = smov [#allocation5]   ;;  %s154_s25 = int_to_ptr.hbm [resolvable:$true] %s153_s25 }
   0xd   : > { %p2126_p8 = pnand %p1423_p5, %p142_p7  ;;  %s155_s28 = sshll.u32 %s2048_s27, 4  ;;  %s156_s28 = int_to_ptr.vmem [resolvable:$true] %s155_s28 }
   0xe   : > { %s167_s6 = sshll.u32 %s2608_s2, 4  ;;  %s2049_s7 = smov 64   ;;  %s168_s6 = int_to_ptr.hbm [resolvable:$true] %s167_s6 }
   0xf   : > { %p1727_p9 = pneg %p2126_p8  ;;  %s2050_s8 = smov 4  }
  0x10   : > { %s2051_s9 = smov [#allocation7]   ;;  %s2611_s11 = smov 128  }
  0x11   : > { %p2134_p10 = pnand %p1727_p9, %p43_p1  ;;  %s169_s10 = sshll.u32 %s2051_s9, 4  ;;  %s170_s10 = int_to_ptr.vmem [resolvable:$true] %s169_s10 }
  0x12   : > { %s2612_s12 = smov 8   ;;  %s181_s20 = sshll.u32 %s2609_s3, 4  ;;  %s182_s20 = int_to_ptr.hbm [resolvable:$true] %s181_s20 }
  0x13   : > { %1730 = dma.hbm_to_vmem [thread:$0]  (!%p2134_p10), %s154_s25, 192, %s156_s28, [#allocation6], %s2049_s7, %s2049_s7, %s2050_s8  }
  0x14   : > { %1733 = dma.hbm_to_vmem [thread:$0]  (!%p2134_p10), %s168_s6, 6144, %s170_s10, [#allocation6], %s2611_s11, %s2611_s11, %s2612_s12  }
  0x15   : > { %s2054_s23 = smov [#allocation8]   ;;  %s2055_s25 = smov 32  }
  0x16   : > { %s183_s24 = sshll.u32 %s2054_s23, 4  ;;  %s2056_s27 = smov 2   ;;  %s184_s24 = int_to_ptr.vmem [resolvable:$true] %s183_s24 }
  0x17   : > { %1736 = dma.hbm_to_vmem [thread:$0]  (!%p2134_p10), %s182_s20, 96, %s184_s24, [#allocation9], %s2055_s25, %s2055_s25, %s2056_s27  }
  0x18   : > { %s2155_s28 = sadd.s32 1, %s2046_s18   ;;  %s29_s5 = sadd.s32 1, %s2042_s17 }
  0x19   : > { %s26_s30 = ssub.s32 %s2046_s18, %s2155_s28  ;;  %p36_p13 = scmp.ne.s32.totalorder %s2042_s17, %s2038_s16 }
  0x1a   : > { %p27_p12 = scmp.eq.s32.totalorder %s26_s30, 0  ;;  %p37_p0 = scmp.eq.s32.totalorder %s2046_s18, 0 }
  0x1b   : > { %p1748_p3 = scmp.lt.s32.totalorder %s2046_s18, 2  ;;  %p2169_p7 = por %p129_p2, %p36_p13 }
  0x1c   : > { %s2165_s6 = scalar_select %p27_p12, %s2042_s17, %s29_s5  }
  0x1d   : > { %p38_p5 = por %p37_p0, %p36_p13  ;;  %s197_s8 = sand.u32 1, %s2042_s17  }
  0x1e   : > { %s1656_s29 = sshll.u32 %s2046_s18, 3  ;;  %s1709_s9 = smul.u32 24, %s197_s8 }
  0x1f   : > { %s206_s14 = scalar_lea.hbm %s2606_s0, %s1656_s29  ;;  %p2178_p9 = pnand %p1748_p3, %p38_p5 }
  0x20   : > { %s207_s23 = sshll.u32 %s206_s14, 4  ;;  %s201_s24 = scalar_lea.vmem [#allocation2], %s1709_s9  ;;  %s208_s23 = int_to_ptr.hbm [resolvable:$true] %s207_s23 }
  0x21   : > { %s209_s25 = sshll.u32 %s201_s24, 4  ;;  %s198_s27 = scalar_lea.sflag [#allocation3], %s197_s8  ;;  %s210_s25 = int_to_ptr.vmem [resolvable:$true] %s209_s25 }
  0x22   : > { %s1942_s30 = sshra.s32 %s208_s23, 4  ;;  %p1946_p10 = pneg %p2178_p9  ;;  %s1943_s30 = int_to_ptr.hbm [resolvable:$true] %s1942_s30 }
  0x23   : > { %s1944_s5 = scalar_lea.hbm %s1943_s30, 24  ;;  %s1949_s13 = scalar_lea.hbm %s2606_s0, 48 }
  0x24   : > { %p1945_p2 = scmp.ne.s32.totalorder %s1943_s30, %s1944_s5  ;;  %p1950_p0 = scmp.lt.s32.totalorder %s1943_s30, %s2606_s0 }
  0x25   : > { %p1951_p3 = scmp.lt.s32.totalorder %s1949_s13, %s1944_s5 }
  0x26   : > { %p1947_p12 = pnand %p1946_p10, %p1945_p2 }
  0x27   : > { %p1952_p5 = por %p1951_p3, %p1950_p0 }
  0x28   : > { %p1948_p13 = pneg %p1947_p12 }
  0x2a   : > { %p1953_p11 = pnand %p1952_p5, %p1948_p13 }
  0x2c   : > { %1956 = shalt.err (!%p1953_p11)
}
  0x2d   : > { %s2057_s8 = smov 256   ;;  %s2619_s9 = smov 8  }
  0x2e   : > { %s2620_s14 = smov 128   ;;  %221 = sbr.rel (%p2126_p8) target bundleno = 1061 (0x425), region = 36 }
  0x2f   : > { %1740 = dma.hbm_to_vmem [thread:$0]  (!%p2178_p9), %s208_s23, 384, %s210_s25, %s198_s27, %s2057_s8, %s2620_s14, %s2619_s9  }
  0x30   : > { %s2197_s24 = sand.u32 (!%p2126_p8), 1, %s2038_s16  }
  0x31   : > { %s1710_s11 = smul.u32 (!%p2126_p8), 24, %s2197_s24  ;;  %s224_s12 = scalar_lea.sflag (!%p2126_p8), [#allocation3], %s2197_s24 }
  0x33   : > { %s227_s30 = scalar_lea.vmem [#allocation2], %s1710_s11 }
  0x34   : > { %2017 = dma.done.wait (%p2113_p4), %s224_s12, 384  }
  0x35   : > { %2019 = vsyncadd (%p2113_p4), %s224_s12, 4294966912 }
  0x36   : > { %2021 = dma.done.wait (%p43_p1), [#allocation6], 6336  }
  0x37   : > { %2023 = vsyncadd (%p43_p1), [#allocation6], 4294960960 }
  0x38   : > { %2025 = dma.done.wait (%p43_p1), [#allocation9], 96  }
  0x39   : > { %2027 = vsyncadd (%p43_p1), [#allocation9], 4294967200  ;;  %v276_v0 = vld [vmem:[%s227_s30 + $0x10] sm:$0xff]  ;;  %vm307_vm0 = vcmask 1043456   ;;  %v1441_v3 = vld [vmem:[%s227_s30] sm:$0xf] }
  0x3a   : > { %v292_v1 = vunpack.c.l.b16 %v276_v0  ;;  %v293_v2 = vunpack.c.h.b16 %v276_v0  ;;  %v1659_v4 = vld [vmem:[%s227_s30 + $0x4] sm:$0xf0]  ;;  %v1658_v5 = vld [vmem:[%s227_s30 + $0x4] sm:$0xf]  ;;  %v1443_v6 = vld [vmem:[%s227_s30 + $0x8] sm:$0xf0] }
  0x3b   : > { %v1509_v7 = vld [vmem:[#allocation7 + $0x70] sm:$0xf]  ;;  %v1675_v8 = vld [vmem:[#allocation7 + $0x74] sm:$0xf0]  ;;  %v1674_v12 = vld [vmem:[#allocation7 + $0x74] sm:$0xf]  ;;  %v1442_v22 = vor.u32 %v1659_v4, %v1441_v3  ;;  %v1446_v23 = vor.u32 %v1658_v5, %v1443_v6 }
  0x3c   : > { %v296_v9 = vpack.c.b16 %v292_v1, %v292_v1  ;;  %v297_v10 = vpack.c.b16 %v293_v2, %v293_v2  ;;  %v1510_v11 = vor.u32 %v1675_v8, %v1509_v7  ;;  %v1511_v13 = vld [vmem:[#allocation7 + $0x78] sm:$0xf0]  ;;  %v1501_v14 = vld [vmem:[#allocation7 + $0x60] sm:$0xf]  ;;  %v1673_v16 = vld [vmem:[#allocation7 + $0x64] sm:$0xf0] }
  0x3d   : > { %v1514_v15 = vor.u32 %v1674_v12, %v1511_v13  ;;  %v1502_v19 = vor.u32 %v1673_v16, %v1501_v14  ;;  %v1672_v20 = vld [vmem:[#allocation7 + $0x64] sm:$0xf]  ;;  %v1503_v21 = vld [vmem:[#allocation7 + $0x68] sm:$0xf0]  ;;  %v1493_v24 = vld [vmem:[#allocation7 + $0x50] sm:$0xf] }
  0x3e   : > { %v309_v17 = vsel %vm307_vm0, %v296_v9, 0  ;;  %v312_v18 = vsel %vm307_vm0, %v297_v10, 0  ;;  %465 = vmatpush.bf16.msra.mxu2 %v1510_v11  ;;  %v1671_v25 = vld [vmem:[#allocation7 + $0x54] sm:$0xf0]  ;;  %v1506_v26 = vor.u32 %v1672_v20, %v1503_v21  ;;  %v1670_v28 = vld [vmem:[#allocation7 + $0x54] sm:$0xf] }
  0x3f   : > { %320 = vmatpush.bf16.msra.mxu0 %v309_v17  ;;  %338 = vmatpush.bf16.msra.mxu1 %v312_v18  ;;  %v2215_v27 = vld [vmem:[#allocation5] sm:$0xff]  ;;  %v1495_v29 = vld [vmem:[#allocation7 + $0x58] sm:$0xf0]  ;;  %vm300_vm1 = vcmask 195584   ;;  %v1494_v30 = vor.u32 %v1671_v25, %v1493_v24  ;;  %v1485_v31 = vld [vmem:[#allocation7 + $0x40] sm:$0xf] }
  0x40   : > { %483 = vmatpush.bf16.msra.mxu3 %v1514_v15  ;;  %v1669_v32 = vld [vmem:[#allocation7 + $0x44] sm:$0xf0]  ;;  %v1498_v33 = vor.u32 %v1670_v28, %v1495_v29  ;;  %v1668_v34 = vld [vmem:[#allocation7 + $0x44] sm:$0xf]  ;;  %v1487_v35 = vld [vmem:[#allocation7 + $0x48] sm:$0xf0] }
  0x41   : > { %v1486_v36 = vor.u32 %v1669_v32, %v1485_v31  ;;  %v1490_v37 = vor.u32 %v1668_v34, %v1487_v35  ;;  %v273_v38 = vld [vmem:[#allocation5 + $0x8] sm:$0xf]  ;;  %v1477_v41 = vld [vmem:[#allocation7 + $0x30] sm:$0xf]  ;;  %v1667_v42 = vld [vmem:[#allocation7 + $0x34] sm:$0xf0] }
  0x42   : > { %466 = vmatpush.bf16.msra.mxu2 %v1502_v19  ;;  %v282_v39 = vunpack.c.l.b16 %v273_v38  ;;  %v1666_v43 = vld [vmem:[#allocation7 + $0x34] sm:$0xf]  ;;  %v1478_v44 = vor.u32 %v1667_v42, %v1477_v41  ;;  %v1479_v45 = vld [vmem:[#allocation7 + $0x38] sm:$0xf0]  ;;  %v1469_v47 = vld [vmem:[#allocation7 + $0x20] sm:$0xf] }
  0x43   : > { %321 = vmatpush.bf16.msra.mxu0 %v1442_v22  ;;  %339 = vmatpush.bf16.msra.mxu1 %v1446_v23  ;;  %v1482_v46 = vor.u32 %v1666_v43, %v1479_v45  ;;  %v1665_v48 = vld [vmem:[#allocation7 + $0x24] sm:$0xf0]  ;;  %v1664_v49 = vld [vmem:[#allocation7 + $0x24] sm:$0xf]  ;;  %v1471_v51 = vld [vmem:[#allocation7 + $0x28] sm:$0xf0] }
  0x44   : > { %484 = vmatpush.bf16.msra.mxu3 %v1506_v26  ;;  %v2221_v40 = vpack.c.b16 %v282_v39, %v282_v39  ;;  %v1470_v50 = vor.u32 %v1665_v48, %v1469_v47  ;;  %v1474_v52 = vor.u32 %v1664_v49, %v1471_v51  ;;  %v1461_v53 = vld [vmem:[#allocation7 + $0x10] sm:$0xf]  ;;  %v1663_v54 = vld [vmem:[#allocation7 + $0x14] sm:$0xf0]  ;;  %v1662_v55 = vld [vmem:[#allocation7 + $0x14] sm:$0xf] }
  0x45   : > { %v1462_v56 = vor.u32 %v1663_v54, %v1461_v53  ;;  %v1463_v57 = vld [vmem:[#allocation7 + $0x18] sm:$0xf0]  ;;  %v1453_v59 = vld [vmem:[#allocation7] sm:$0xf]  ;;  %v1661_v60 = vld [vmem:[#allocation7 + $0x4] sm:$0xf0] }
  0x46   : > { %1447 = vmatmul.msk.bf16.vlgmr.msra.gmra.mxu0 %vm300_vm1, %v2215_v27  ;;  %1449 = vmatmul.msk.bf16.vlgmr.msra.gmra.mxu1 %vm300_vm1, %v2215_v27  ;;  %v1466_v58 = vor.u32 %v1662_v55, %v1463_v57  ;;  %v1660_v61 = vld [vmem:[#allocation7 + $0x4] sm:$0xf]  ;;  %v1454_v62 = vor.u32 %v1661_v60, %v1453_v59  ;;  %v1455_v63 = vld [vmem:[#allocation7 + $0x8] sm:$0xf0]  ;;  %v369_v22 = vld [vmem:[#allocation8] sm:$0x3] }
  0x47   : > { %568 = vmatpush.bf16.msrb.mxu0 %v1510_v11  ;;  %586 = vmatpush.bf16.msrb.mxu1 %v1514_v15  ;;  %v1458_v0 = vor.u32 %v1660_v61, %v1455_v63  ;;  %v372_v23 = vperm.slane %v369_v22, 1  ;;  %s1434_s21 = sshll.u32 %s2197_s24, 4  ;;  %s1708_s26 = sshll.u32 %s2104_s19, 4 }
  0x48   : > { %467 = vmatpush.bf16.msra.mxu2 %v1494_v30  ;;  %485 = vmatpush.bf16.msra.mxu3 %v1498_v33  ;;  %s1318_s25 = scalar_lea.hbm %s2610_s4, %s1708_s26  ;;  %s267_s27 = scalar_lea.vmem [#allocation10], %s1434_s21 }
  0x49   : > { %s1320_s19 = sshll.u32 %s267_s27, 4  ;;  %s1322_s5 = sshll.u32 %s1318_s25, 4  ;;  %s1321_s19 = int_to_ptr.vmem [resolvable:$true] %s1320_s19  ;;  %s1323_s5 = int_to_ptr.hbm [resolvable:$true] %s1322_s5 }
  0x4a   : > { %s1307_s29 = scalar_lea.sflag [#allocation4], %s2197_s24  ;;  %s1986_s10 = sshra.s32 %s1323_s5, 4  ;;  %s1987_s10 = int_to_ptr.hbm [resolvable:$true] %s1986_s10 }
  0x4b   : > { %569 = vmatpush.bf16.msrb.mxu0 %v1502_v19  ;;  %587 = vmatpush.bf16.msrb.mxu1 %v1506_v26  ;;  %s1988_s13 = scalar_lea.hbm %s1987_s10, 16  ;;  %s1992_s14 = scalar_lea.hbm %s2610_s4, 32 }
  0x4c   : > { %468 = vmatpush.bf16.msra.mxu2 %v1486_v36  ;;  %486 = vmatpush.bf16.msra.mxu3 %v1490_v37  ;;  %p1989_p1 = scmp.ne.s32.totalorder %s1987_s10, %s1988_s13  ;;  %p1993_p11 = scmp.lt.s32.totalorder %s1987_s10, %s2610_s4 }
  0x4d   : > { %p1994_p9 = scmp.lt.s32.totalorder %s1992_s14, %s1988_s13 }
  0x4e   : > { %p1990_p4 = pnand %p1989_p1, %p2169_p7 }
  0x4f   : > { %570 = vmatpush.bf16.msrb.mxu0 %v1494_v30  ;;  %588 = vmatpush.bf16.msrb.mxu1 %v1498_v33  ;;  %p1995_p2 = por %p1994_p9, %p1993_p11 }
  0x50   : > { %469 = vmatpush.bf16.msra.mxu2 %v1478_v44  ;;  %487 = vmatpush.bf16.msra.mxu3 %v1482_v46  ;;  %p1991_p8 = pneg %p1990_p4 }
  0x52   : > { %p1996_p10 = pnand %p1995_p2, %p1991_p8 }
  0x53   : > { %571 = vmatpush.bf16.msrb.mxu0 %v1486_v36  ;;  %589 = vmatpush.bf16.msrb.mxu1 %v1490_v37 }
  0x54   : > { %470 = vmatpush.bf16.msra.mxu2 %v1470_v50  ;;  %488 = vmatpush.bf16.msra.mxu3 %v1474_v52 }
  0x56   : > { %1448 = vmatmul.msk.bf16.gmra.mxu0 %vm300_vm1, %v2221_v40  ;;  %1450 = vmatmul.msk.bf16.gmra.mxu1 %vm300_vm1, %v2221_v40 }
  0x57   : > { %572 = vmatpush.bf16.msrb.mxu0 %v1478_v44  ;;  %590 = vmatpush.bf16.msrb.mxu1 %v1482_v46 }
  0x58   : > { %471 = vmatpush.bf16.msra.mxu2 %v1462_v56  ;;  %489 = vmatpush.bf16.msra.mxu3 %v1466_v58 }
  0x5b   : > { %573 = vmatpush.bf16.msrb.mxu0 %v1470_v50  ;;  %591 = vmatpush.bf16.msrb.mxu1 %v1474_v52 }
  0x5c   : > { %472 = vmatpush.bf16.msra.mxu2 %v1454_v62  ;;  %490 = vmatpush.bf16.msra.mxu3 %v1458_v0 }
  0x5f   : > { %574 = vmatpush.bf16.msrb.mxu0 %v1462_v56  ;;  %592 = vmatpush.bf16.msrb.mxu1 %v1466_v58 }
  0x63   : > { %575 = vmatpush.bf16.msrb.mxu0 %v1454_v62  ;;  %593 = vmatpush.bf16.msrb.mxu1 %v1458_v0 }
  0xc3   : > { %v323_v1 = vpop.f32.mrf.mxu0  ;;  %v341_v2 = vpop.f32.mrf.mxu1 }
  0xc4   : > { %v350_v3 = vpack.c.bf16 %v341_v2, %v323_v1 }
  0xc6   : > { %v378_v7 = vunpack.c.l.b16 %v350_v3  ;;  %v561_v8 = vunpack.c.h.b16 %v350_v3 }
  0xcb   : > { %v325_v4 = vpop.f32.mrf.mxu0  ;;  %v343_v5 = vpop.f32.mrf.mxu1 }
  0xcc   : > { %v351_v6 = vpack.c.bf16 %v343_v5, %v325_v4 }
  0xce   : > { %v379_v9 = vunpack.c.l.b16 %v351_v6  ;;  %v562_v10 = vunpack.c.h.b16 %v351_v6 }
  0xd0   : > { %v381_v11 = vpack.c.b16 %v379_v9, %v378_v7  ;;  %v564_v12 = vpack.c.b16 %v562_v10, %v561_v8 }
  0xd2   : > { %473 = vmatmul.bf16.vlgmr.msra.gmra.mxu2 %v381_v11  ;;  %491 = vmatmul.bf16.vlgmr.msra.gmra.mxu3 %v381_v11  ;;  %v2259_v11 = vperm.slane %v369_v22, 0 }
  0xd3   : > { %576 = vmatmul.bf16.vlgmr.msrb.gmra.mxu0 %v564_v12  ;;  %594 = vmatmul.bf16.vlgmr.msrb.gmra.mxu1 %v564_v12  ;;  %v328_v13 = vpop.f32.mrf.mxu0  ;;  %v346_v14 = vpop.f32.mrf.mxu1 }
  0xd4   : > { %v352_v15 = vpack.c.bf16 %v346_v14, %v328_v13 }
  0xd6   : > { %v380_v16 = vunpack.c.l.b16 %v352_v15  ;;  %v563_v19 = vunpack.c.h.b16 %v352_v15 }
  0xd8   : > { %v382_v20 = vpack.c.b16 %v380_v16, %v380_v16  ;;  %v565_v21 = vpack.c.b16 %v563_v19, %v563_v19 }
  0xdb   : > { %v330_v17 = vpop.f32.mrf.mxu0  ;;  %v348_v18 = vpop.f32.mrf.mxu1 }
  0xe2   : > { %478 = vmatmul.bf16.gmra.mxu2 %v382_v20  ;;  %496 = vmatmul.bf16.gmra.mxu3 %v382_v20 }
  0xe3   : > { %581 = vmatmul.bf16.gmra.mxu0 %v565_v21  ;;  %599 = vmatmul.bf16.gmra.mxu1 %v565_v21 }
 0x150   : > { %v2227_v24 = vpop.f32.mrf.mxu0  ;;  %v595_v25 = vpop.f32.mrf.mxu1 }
 0x151   : > { %v596_v26 = vadd.f32 %v595_v25, %v372_v23  ;;  %v2273_v20 = vadd.f32 %v2227_v24, %v2259_v11 }
 0x153   : > { %v604_v28 = vsub.f32 0.0, %v596_v26 }
 0x155   : > { %v607_v29 = vmul.f32 1.442695, %v604_v28  ;;  %v2229_v30 = vpop.f32.mrf.mxu2  ;;  %v492_v31 = vpop.f32.mrf.mxu3 }
 0x156   : > { %v493_v32 = vadd.f32 %v492_v31, %v372_v23 }
 0x157   : > { %1795 = vpow2.f32 %v607_v29  ;;  %v1579_v29 = vld [vmem:[#allocation7 + $0xf8] sm:$0xf0] }
 0x158   : > { %v501_v33 = vsub.f32 0.0, %v493_v32  ;;  %v2231_v34 = vpop.f32.mrf.mxu0  ;;  %v597_v35 = vpop.f32.mrf.mxu1 }
 0x159   : > { %v598_v36 = vadd.f32 %v597_v35, %v372_v23 }
 0x15a   : > { %v504_v37 = vmul.f32 1.442695, %v501_v33 }
 0x15b   : > { %v605_v38 = vsub.f32 0.0, %v598_v36 }
 0x15c   : > { %1797 = vpow2.f32 %v504_v37  ;;  %v1571_v37 = vld [vmem:[#allocation7 + $0xe8] sm:$0xf0] }
 0x15d   : > { %v1796_v39 = vpop.eup %1795  ;;  %v609_v41 = vmul.f32 1.442695, %v605_v38  ;;  %v2233_v42 = vpop.f32.mrf.mxu2 }
 0x15e   : > { %v494_v43 = vpop.f32.mrf.mxu3  ;;  %v2235_v44 = vadd.f32 1.0, %v1796_v39 }
 0x15f   : > { %v495_v45 = vadd.f32 %v494_v43, %v372_v23  ;;  %1799 = vpow2.f32 %v609_v41 }
 0x160   : > { %1801 = vrcp.f32 %v2235_v44  ;;  %v582_v47 = vpop.f32.mrf.mxu0  ;;  %v600_v48 = vpop.f32.mrf.mxu1  ;;  %v625_v15 = vand.u32 2147483647, %v2235_v44  ;;  %v627_v19 = vand.u32 2147483648, %v2235_v44  ;;  %vm621_vm3 = vweird.f32 %v2235_v44 }
 0x161   : > { %v502_v46 = vsub.f32 0.0, %v495_v45  ;;  %v601_v49 = vadd.f32 %v600_v48, %v372_v23  ;;  %v583_v24 = vadd.f32 %v582_v47, %v2259_v11 }
 0x162   : > { %v1798_v52 = vpop.eup %1797  ;;  %vm2286_vm4 = vcmp.eq.f32.partialorder %v625_v15, 8.507059e+37  ;;  %v628_v33 = vor.u32 1.1754944e-38, %v627_v19 }
 0x163   : > { %v506_v50 = vmul.f32 1.442695, %v502_v46  ;;  %v606_v51 = vsub.f32 0.0, %v601_v49  ;;  %v2244_v60 = vadd.f32 1.0, %v1798_v52 }
 0x165   : > { %1803 = vpow2.f32 %v506_v50  ;;  %v1800_v53 = vpop.eup %1799  ;;  %v611_v54 = vmul.f32 1.442695, %v606_v51  ;;  %v2238_v55 = vpop.f32.mrf.mxu2  ;;  %v522_v35 = vand.u32 2147483647, %v2244_v60  ;;  %v524_v41 = vand.u32 2147483648, %v2244_v60 }
 0x166   : > { %v497_v56 = vpop.f32.mrf.mxu3  ;;  %v2240_v57 = vpop.eup %1801  ;;  %v2242_v58 = vadd.f32 1.0, %v1800_v53 }
 0x167   : > { %v498_v59 = vadd.f32 %v497_v56, %v372_v23  ;;  %1805 = vpow2.f32 %v611_v54  ;;  %v617_v0 = vmul.f32 %v2240_v57, %v2235_v44  ;;  %vm622_vm2 = vweird.f32 %v2240_v57 }
 0x168   : > { %1807 = vrcp.f32 %v2242_v58  ;;  %v584_v62 = vpop.f32.mrf.mxu0  ;;  %v602_v63 = vpop.f32.mrf.mxu1  ;;  %v640_v21 = vand.u32 2147483647, %v2242_v58  ;;  %v642_v22 = vand.u32 2147483648, %v2242_v58  ;;  %vm2293_vm5 = vmor %vm621_vm3, %vm622_vm2  ;;  %vm636_vm6 = vweird.f32 %v2242_v58 }
 0x169   : > { %v503_v61 = vsub.f32 0.0, %v498_v59  ;;  %1809 = vrcp.f32 %v2244_v60  ;;  %v618_v7 = vsub.f32 1.0, %v617_v0  ;;  %v1555_v63 = vld [vmem:[#allocation7 + $0xc8] sm:$0xf0] }
 0x16a   : > { %vm2298_vm7 = vcmp.eq.f32.partialorder %v640_v21, 8.507059e+37  ;;  %v643_v39 = vor.u32 1.1754944e-38, %v642_v22  ;;  %v1577_v21 = vld [vmem:[#allocation7 + $0xf0] sm:$0xf]  ;;  %v1691_v22 = vld [vmem:[#allocation7 + $0xf4] sm:$0xf0] }
 0x16b   : > { %v1804_v1 = vpop.eup %1803  ;;  %v508_v2 = vmul.f32 1.442695, %v503_v61  ;;  %v619_v13 = vmul.f32 %v2240_v57, %v618_v7 }
 0x16c   : > { %v2250_v3 = vadd.f32 1.0, %v1804_v1 }
 0x16d   : > { %1811 = vpow2.f32 %v508_v2  ;;  %v1806_v4 = vpop.eup %1805  ;;  %v481_v5 = vpop.f32.mrf.mxu2  ;;  %v620_v25 = vadd.f32 %v2240_v57, %v619_v13 }
 0x16e   : > { %1813 = vrcp.f32 %v2250_v3  ;;  %v499_v6 = vpop.f32.mrf.mxu3  ;;  %v2253_v8 = vpop.eup %1807  ;;  %v2255_v9 = vadd.f32 1.0, %v1806_v4  ;;  %v537_v46 = vand.u32 2147483647, %v2250_v3  ;;  %v539_v49 = vand.u32 2147483648, %v2250_v3 }
 0x16f   : > { %v632_v10 = vmul.f32 %v2253_v8, %v2242_v58  ;;  %v2262_v12 = vpop.eup %1809  ;;  %v624_v44 = vsel %vm2293_vm5, %v2240_v57, %v620_v25  ;;  %vm637_vm9 = vweird.f32 %v2253_v8  ;;  %vm533_vm12 = vweird.f32 %v2250_v3 }
 0x170   : > { %1815 = vrcp.f32 %v2255_v9  ;;  %v514_v26 = vmul.f32 %v2262_v12, %v2244_v60  ;;  %vm519_vm8 = vweird.f32 %v2262_v12  ;;  %v657_v47 = vand.u32 2147483648, %v2255_v9  ;;  %vm2321_vm13 = vmor %vm636_vm6, %vm637_vm9 }
 0x171   : > { %v633_v16 = vsub.f32 1.0, %v632_v10  ;;  %v655_v52 = vand.u32 2147483647, %v2255_v9  ;;  %vm651_vm11 = vweird.f32 %v2255_v9  ;;  %v629_v54 = vsel %vm2286_vm4, %v628_v33, %v624_v44 }
 0x172   : > { %v515_v45 = vsub.f32 1.0, %v514_v26  ;;  %vm2328_vm15 = vcmp.eq.f32.partialorder %v537_v46, 8.507059e+37  ;;  %v658_v0 = vor.u32 1.1754944e-38, %v657_v47  ;;  %v540_v5 = vor.u32 1.1754944e-38, %v539_v49  ;;  %v1687_v49 = vld [vmem:[#allocation7 + $0xd4] sm:$0xf0] }
 0x173   : > { %v1812_v14 = vpop.eup %1811  ;;  %v634_v31 = vmul.f32 %v2253_v8, %v633_v16  ;;  %vm656_vm4 = vcmp.eq.f32.partialorder %v655_v52, 8.507059e+37  ;;  %v661_v26 = vmul.f32 %v629_v54, %v2273_v20 }
 0x174   : > { %v2266_v17 = vpop.eup %1813  ;;  %v2268_v18 = vadd.f32 1.0, %v1812_v14  ;;  %v516_v62 = vmul.f32 %v2262_v12, %v515_v45  ;;  %v525_v45 = vor.u32 1.1754944e-38, %v524_v41  ;;  %v475_v41 = vadd.f32 %v2229_v30, %v2259_v11  ;;  %v1553_v30 = vld [vmem:[#allocation7 + $0xc0] sm:$0xf]  ;;  %v1529_v14 = vld [vmem:[#allocation7 + $0x90] sm:$0xf] }
 0x175   : > { %v529_v23 = vmul.f32 %v2266_v17, %v2250_v3  ;;  %v635_v48 = vadd.f32 %v2253_v8, %v634_v31  ;;  %vm534_vm14 = vweird.f32 %v2266_v17  ;;  %v480_v3 = vadd.f32 %v2238_v55, %v2259_v11  ;;  %v1569_v31 = vld [vmem:[#allocation7 + $0xe0] sm:$0xf] }
 0x176   : > { %1817 = vrcp.f32 %v2268_v18  ;;  %v1816_v28 = vpop.eup %1815  ;;  %v554_v61 = vand.u32 2147483648, %v2268_v18  ;;  %vm548_vm5 = vweird.f32 %v2268_v18  ;;  %vm2342_vm6 = vmor %vm533_vm12, %vm534_vm14  ;;  %v517_v16 = vadd.f32 %v2262_v12, %v516_v62 }
 0x177   : > { %v647_v32 = vmul.f32 %v1816_v28, %v2255_v9  ;;  %v530_v36 = vsub.f32 1.0, %v529_v23  ;;  %vm652_vm10 = vweird.f32 %v1816_v28  ;;  %v639_v58 = vsel %vm2321_vm13, %v2253_v8, %v635_v48  ;;  %v1690_v23 = vld [vmem:[#allocation7 + $0xf4] sm:$0xf]  ;;  %v1561_v48 = vld [vmem:[#allocation7 + $0xd0] sm:$0xf] }
 0x178   : > { %vm653_vm2 = vmor %vm651_vm11, %vm652_vm10  ;;  %v552_v9 = vand.u32 2147483647, %v2268_v18  ;;  %v644_v13 = vsel %vm2298_vm7, %v643_v39, %v639_v58  ;;  %v555_v15 = vor.u32 1.1754944e-38, %v554_v61  ;;  %vm518_vm10 = vweird.f32 %v2244_v60  ;;  %v1684_v61 = vld [vmem:[#allocation7 + $0xc4] sm:$0xf] }
 0x179   : > { %v648_v43 = vsub.f32 1.0, %v647_v32  ;;  %v531_v53 = vmul.f32 %v2266_v17, %v530_v36  ;;  %vm2368_vm11 = vmor %vm518_vm10, %vm519_vm8  ;;  %v1582_v20 = vor.u32 %v1690_v23, %v1579_v29  ;;  %v1688_v36 = vld [vmem:[#allocation7 + $0xe4] sm:$0xf]  ;;  %vm523_vm8 = vcmp.eq.f32.partialorder %v522_v35, 8.507059e+37  ;;  %v1683_v58 = vld [vmem:[#allocation7 + $0xb4] sm:$0xf0] }
 0x17a   : > { %vm553_vm7 = vcmp.eq.f32.partialorder %v552_v9, 8.507059e+37  ;;  %v521_v39 = vsel %vm2368_vm11, %v2262_v12, %v517_v16  ;;  %v1574_v47 = vor.u32 %v1688_v36, %v1571_v37  ;;  %v1686_v12 = vld [vmem:[#allocation7 + $0xd4] sm:$0xf]  ;;  %v1680_v9 = vld [vmem:[#allocation7 + $0xa4] sm:$0xf] }
 0x17b   : > { %v649_v51 = vmul.f32 %v1816_v28, %v648_v43  ;;  %v532_v4 = vadd.f32 %v2266_v17, %v531_v53  ;;  %845 = vmatpush.bf16.msra.mxu1 %v1582_v20  ;;  %v526_v54 = vsel %vm523_vm8, %v525_v45, %v521_v39  ;;  %v1678_v16 = vld [vmem:[#allocation7 + $0x94] sm:$0xf]  ;;  %v1676_v23 = vld [vmem:[#allocation7 + $0x84] sm:$0xf] }
 0x17c   : > { %v1818_v50 = vpop.eup %1817  ;;  %v558_v60 = vmul.f32 %v526_v54, %v475_v41 }
 0x17d   : > { %v544_v56 = vmul.f32 %v1818_v50, %v2268_v18  ;;  %v650_v57 = vadd.f32 %v1816_v28, %v649_v51  ;;  %vm549_vm3 = vweird.f32 %v1818_v50  ;;  %v580_v18 = vadd.f32 %v2231_v34, %v2259_v11  ;;  %v1689_v34 = vld [vmem:[#allocation7 + $0xe4] sm:$0xf0]  ;;  %v1563_v51 = vld [vmem:[#allocation7 + $0xd8] sm:$0xf0] }
 0x17e   : > { %vm2348_vm9 = vmor %vm548_vm5, %vm549_vm3  ;;  %v1570_v43 = vor.u32 %v1689_v34, %v1569_v31 }
 0x17f   : > { %v545_v1 = vsub.f32 1.0, %v544_v56  ;;  %v654_v2 = vsel %vm653_vm2, %v1816_v28, %v650_v57  ;;  %v536_v28 = vsel %vm2342_vm6, %v2266_v17, %v532_v4  ;;  %v2362_v32 = vmul.f32 %v644_v13, %v580_v18  ;;  %846 = vmatpush.bf16.msra.mxu1 %v1574_v47  ;;  %v1547_v4 = vld [vmem:[#allocation7 + $0xb8] sm:$0xf0] }
 0x180   : > { %v659_v6 = vsel %vm656_vm4, %v658_v0, %v654_v2  ;;  %v541_v46 = vsel %vm2328_vm15, %v540_v5, %v536_v28  ;;  %v1562_v57 = vor.u32 %v1687_v49, %v1561_v48  ;;  %v1558_v0 = vor.u32 %v1684_v61, %v1555_v63 }
 0x181   : > { %v546_v7 = vmul.f32 %v1818_v50, %v545_v1  ;;  %v663_v8 = vmul.f32 %v659_v6, %v583_v24  ;;  %v1578_v24 = vor.u32 %v1691_v22, %v1577_v21  ;;  %v665_v52 = vpack.c.bf16 %v2362_v32, %v661_v26  ;;  %v1682_v1 = vld [vmem:[#allocation7 + $0xb4] sm:$0xf]  ;;  %v1537_v6 = vld [vmem:[#allocation7 + $0xa0] sm:$0xf]  ;;  %v1677_v22 = vld [vmem:[#allocation7 + $0x84] sm:$0xf0] }
 0x182   : > { %v1550_v5 = vor.u32 %v1682_v1, %v1547_v4  ;;  %v1521_v21 = vld [vmem:[#allocation7 + $0x80] sm:$0xf]  ;;  %v1523_v26 = vld [vmem:[#allocation7 + $0x88] sm:$0xf0] }
 0x183   : > { %v547_v19 = vadd.f32 %v1818_v50, %v546_v7  ;;  %v667_v25 = vpack.c.bf16 %v663_v8, %v663_v8  ;;  %827 = vmatpush.bf16.msra.mxu0 %v1578_v24  ;;  %v1681_v7 = vld [vmem:[#allocation7 + $0xa4] sm:$0xf0]  ;;  %v1539_v8 = vld [vmem:[#allocation7 + $0xa8] sm:$0xf0]  ;;  %v1526_v28 = vor.u32 %v1676_v23, %v1523_v26 }
 0x184   : > { %v1538_v10 = vor.u32 %v1681_v7, %v1537_v6  ;;  %v1542_v13 = vor.u32 %v1680_v9, %v1539_v8 }
 0x185   : > { %v551_v55 = vsel %vm2348_vm9, %v1818_v50, %v547_v19  ;;  %v672_v17 = vsel %vm307_vm0, %v667_v25, 0  ;;  %v477_v50 = vadd.f32 %v2233_v42, %v2259_v11  ;;  %v1566_v42 = vor.u32 %v1686_v12, %v1563_v51  ;;  %v1685_v11 = vld [vmem:[#allocation7 + $0xc4] sm:$0xf0]  ;;  %v731_v51 = vld [vmem:[#allocation8 + $0x2] sm:$0x3] }
 0x186   : > { %v556_v38 = vsel %vm553_vm7, %v555_v15, %v551_v55  ;;  %698 = vmatpush.bf16.msrb.mxu3 %v672_v17  ;;  %v1554_v62 = vor.u32 %v1685_v11, %v1553_v30  ;;  %v1679_v15 = vld [vmem:[#allocation7 + $0x94] sm:$0xf0]  ;;  %v1522_v25 = vor.u32 %v1677_v22, %v1521_v21 }
 0x187   : > { %v560_v44 = vmul.f32 %v556_v38, %v480_v3  ;;  %v2387_v56 = vmul.f32 %v541_v46, %v477_v50  ;;  %828 = vmatpush.bf16.msra.mxu0 %v1570_v43  ;;  %847 = vmatpush.bf16.msra.mxu1 %v1566_v42  ;;  %v1530_v18 = vor.u32 %v1679_v15, %v1529_v14  ;;  %v1531_v3 = vld [vmem:[#allocation7 + $0x98] sm:$0xf0] }
 0x188   : > { %v1534_v19 = vor.u32 %v1678_v16, %v1531_v3 }
 0x189   : > { %v666_v53 = vpack.c.bf16 %v560_v44, %v560_v44  ;;  %v664_v35 = vpack.c.bf16 %v2387_v56, %v558_v60 }
 0x18a   : > { %699 = vmatpush.bf16.msrb.mxu3 %v665_v52  ;;  %v734_v52 = vperm.slane %v731_v51, 1 }
 0x18b   : > { %v669_v59 = vsel %vm307_vm0, %v666_v53, 0  ;;  %829 = vmatpush.bf16.msra.mxu0 %v1562_v57  ;;  %848 = vmatpush.bf16.msra.mxu1 %v1558_v0 }
 0x18c   : > { %680 = vmatpush.bf16.msrb.mxu2 %v669_v59 }
 0x18d   : > { %1517 = vmatmul.msk.bf16.vlgmr.msrb.gmra.mxu3 %vm300_vm1, %v2215_v27 }
 0x18e   : > { %948 = vmatpush.bf16.msra.mxu3 %v1582_v20 }
 0x18f   : > { %830 = vmatpush.bf16.msra.mxu0 %v1554_v62  ;;  %849 = vmatpush.bf16.msra.mxu1 %v1550_v5 }
 0x190   : > { %681 = vmatpush.bf16.msrb.mxu2 %v664_v35 }
 0x192   : > { %949 = vmatpush.bf16.msra.mxu3 %v1574_v47 }
 0x193   : > { %1515 = vmatmul.msk.bf16.vlgmr.msrb.gmra.mxu2 %vm300_vm1, %v2215_v27  ;;  %v1545_v27 = vld [vmem:[#allocation7 + $0xb0] sm:$0xf]  ;;  %850 = vmatpush.bf16.msra.mxu1 %v1542_v13 }
 0x194   : > { %930 = vmatpush.bf16.msra.mxu2 %v1578_v24  ;;  %v1546_v2 = vor.u32 %v1683_v58, %v1545_v27 }
 0x196   : > { %950 = vmatpush.bf16.msra.mxu3 %v1566_v42  ;;  %831 = vmatpush.bf16.msra.mxu0 %v1546_v2 }
 0x197   : > { %851 = vmatpush.bf16.msra.mxu1 %v1534_v19 }
 0x198   : > { %931 = vmatpush.bf16.msra.mxu2 %v1570_v43 }
 0x19a   : > { %951 = vmatpush.bf16.msra.mxu3 %v1558_v0  ;;  %832 = vmatpush.bf16.msra.mxu0 %v1538_v10 }
 0x19b   : > { %852 = vmatpush.bf16.msra.mxu1 %v1526_v28 }
 0x19c   : > { %932 = vmatpush.bf16.msra.mxu2 %v1562_v57 }
 0x19d   : > { %1518 = vmatmul.msk.bf16.gmra.mxu3 %vm300_vm1, %v2221_v40 }
 0x19e   : > { %952 = vmatpush.bf16.msra.mxu3 %v1550_v5  ;;  %833 = vmatpush.bf16.msra.mxu0 %v1530_v18 }
 0x1a0   : > { %933 = vmatpush.bf16.msra.mxu2 %v1554_v62 }
 0x1a2   : > { %953 = vmatpush.bf16.msra.mxu3 %v1542_v13  ;;  %834 = vmatpush.bf16.msra.mxu0 %v1522_v25 }
 0x1a3   : > { %1516 = vmatmul.msk.bf16.gmra.mxu2 %vm300_vm1, %v2221_v40 }
 0x1a4   : > { %934 = vmatpush.bf16.msra.mxu2 %v1546_v2 }
 0x1a6   : > { %954 = vmatpush.bf16.msra.mxu3 %v1534_v19 }
 0x1a8   : > { %935 = vmatpush.bf16.msra.mxu2 %v1538_v10 }
 0x1aa   : > { %955 = vmatpush.bf16.msra.mxu3 %v1526_v28 }
 0x1ac   : > { %936 = vmatpush.bf16.msra.mxu2 %v1530_v18 }
 0x1b0   : > { %937 = vmatpush.bf16.msra.mxu2 %v1522_v25 }
 0x210   : > { %v701_v24 = vpop.f32.mrf.mxu3 }
 0x216   : > { %v683_v29 = vpop.f32.mrf.mxu2 }
 0x217   : > { %v710_v34 = vpack.c.bf16 %v701_v24, %v683_v29 }
 0x218   : > { %v703_v31 = vpop.f32.mrf.mxu3 }
 0x219   : > { %v740_v20 = vunpack.c.l.b16 %v710_v34  ;;  %v923_v36 = vunpack.c.h.b16 %v710_v34 }
 0x21e   : > { %v685_v55 = vpop.f32.mrf.mxu2 }
 0x21f   : > { %v711_v33 = vpack.c.bf16 %v703_v31, %v685_v55 }
 0x220   : > { %v706_v38 = vpop.f32.mrf.mxu3 }
 0x221   : > { %v741_v37 = vunpack.c.l.b16 %v711_v33  ;;  %v924_v17 = vunpack.c.h.b16 %v711_v33 }
 0x223   : > { %v743_v39 = vpack.c.b16 %v741_v37, %v740_v20  ;;  %v926_v43 = vpack.c.b16 %v924_v17, %v923_v36 }
 0x225   : > { %835 = vmatmul.bf16.vlgmr.msra.gmra.mxu0 %v743_v39  ;;  %853 = vmatmul.bf16.vlgmr.msra.gmra.mxu1 %v743_v39 }
 0x226   : > { %938 = vmatmul.bf16.vlgmr.msra.gmra.mxu2 %v926_v43  ;;  %956 = vmatmul.bf16.vlgmr.msra.gmra.mxu3 %v926_v43  ;;  %v688_v44 = vpop.f32.mrf.mxu2 }
 0x227   : > { %v712_v45 = vpack.c.bf16 %v706_v38, %v688_v44  ;;  %v2427_v38 = vperm.slane %v731_v51, 0 }
 0x228   : > { %v708_v46 = vpop.f32.mrf.mxu3 }
 0x229   : > { %v742_v47 = vunpack.c.l.b16 %v712_v45  ;;  %v925_v49 = vunpack.c.h.b16 %v712_v45 }
 0x22b   : > { %v744_v50 = vpack.c.b16 %v742_v47, %v742_v47  ;;  %v927_v12 = vpack.c.b16 %v925_v49, %v925_v49 }
 0x22e   : > { %v690_v48 = vpop.f32.mrf.mxu2 }
 0x235   : > { %840 = vmatmul.bf16.gmra.mxu0 %v744_v50  ;;  %858 = vmatmul.bf16.gmra.mxu1 %v744_v50 }
 0x236   : > { %943 = vmatmul.bf16.gmra.mxu2 %v927_v12  ;;  %961 = vmatmul.bf16.gmra.mxu3 %v927_v12 }
 0x2a2   : > { %v2399_v53 = vpop.f32.mrf.mxu0  ;;  %v854_v54 = vpop.f32.mrf.mxu1 }
 0x2a3   : > { %v855_v41 = vadd.f32 %v854_v54, %v734_v52  ;;  %v2436_v48 = vadd.f32 %v2399_v53, %v2427_v38 }
 0x2a5   : > { %v863_v57 = vsub.f32 0.0, %v855_v41 }
 0x2a7   : > { %v866_v59 = vmul.f32 1.442695, %v863_v57 }
 0x2a9   : > { %v2401_v42 = vpop.f32.mrf.mxu2  ;;  %v957_v60 = vpop.f32.mrf.mxu3  ;;  %1819 = vpow2.f32 %v866_v59 }
 0x2aa   : > { %v958_v35 = vadd.f32 %v957_v60, %v734_v52  ;;  %v838_v30 = vpop.f32.mrf.mxu0  ;;  %v856_v11 = vpop.f32.mrf.mxu1 }
 0x2ab   : > { %v857_v61 = vadd.f32 %v856_v11, %v734_v52  ;;  %v2441_v50 = vadd.f32 %v838_v30, %v2427_v38 }
 0x2ac   : > { %v966_v62 = vsub.f32 0.0, %v958_v35 }
 0x2ad   : > { %v864_v63 = vsub.f32 0.0, %v857_v61 }
 0x2ae   : > { %v969_v0 = vmul.f32 1.442695, %v966_v62 }
 0x2af   : > { %v868_v27 = vmul.f32 1.442695, %v864_v63  ;;  %v1820_v58 = vpop.eup %1819 }
 0x2b0   : > { %1821 = vpow2.f32 %v969_v0  ;;  %v2405_v7 = vadd.f32 1.0, %v1820_v58 }
 0x2b1   : > { %1823 = vpow2.f32 %v868_v27  ;;  %v2403_v1 = vpop.f32.mrf.mxu2  ;;  %v959_v2 = vpop.f32.mrf.mxu3 }
 0x2b2   : > { %v960_v4 = vadd.f32 %v959_v2, %v734_v52  ;;  %v841_v5 = vpop.f32.mrf.mxu0  ;;  %v859_v6 = vpop.f32.mrf.mxu1  ;;  %1825 = vrcp.f32 %v2405_v7  ;;  %v886_v46 = vand.u32 2147483648, %v2405_v7  ;;  %vm880_vm12 = vweird.f32 %v2405_v7 }
 0x2b3   : > { %v860_v9 = vadd.f32 %v859_v6, %v734_v52  ;;  %v884_v53 = vand.u32 2147483647, %v2405_v7  ;;  %v842_v60 = vadd.f32 %v841_v5, %v2427_v38 }
 0x2b4   : > { %v967_v10 = vsub.f32 0.0, %v960_v4  ;;  %v887_v35 = vor.u32 1.1754944e-38, %v886_v46  ;;  %v1694_v46 = vld [vmem:[#allocation7 + $0x114] sm:$0xf] }
 0x2b5   : > { %v865_v8 = vsub.f32 0.0, %v860_v9  ;;  %vm2465_vm3 = vcmp.eq.f32.partialorder %v884_v53, 8.507059e+37  ;;  %v1706_v53 = vld [vmem:[#allocation7 + $0x174] sm:$0xf] }
 0x2b6   : > { %v1822_v13 = vpop.eup %1821  ;;  %v971_v14 = vmul.f32 1.442695, %v967_v10 }
 0x2b7   : > { %v1824_v15 = vpop.eup %1823  ;;  %v870_v16 = vmul.f32 1.442695, %v865_v8  ;;  %v2412_v21 = vadd.f32 1.0, %v1822_v13 }
 0x2b8   : > { %v2408_v18 = vadd.f32 1.0, %v1824_v15  ;;  %1827 = vpow2.f32 %v971_v14  ;;  %v2415_v28 = vpop.eup %1825 }
 0x2b9   : > { %v2410_v3 = vpop.f32.mrf.mxu2  ;;  %v962_v19 = vpop.f32.mrf.mxu3  ;;  %v876_v55 = vmul.f32 %v2415_v28, %v2405_v7  ;;  %v989_v57 = vand.u32 2147483648, %v2412_v21  ;;  %vm881_vm13 = vweird.f32 %v2415_v28  ;;  %vm983_vm14 = vweird.f32 %v2412_v21  ;;  %v1703_v7 = vld [vmem:[#allocation7 + $0x154] sm:$0xf0] }
 0x2ba   : > { %1829 = vrcp.f32 %v2408_v18  ;;  %v963_v22 = vadd.f32 %v962_v19, %v734_v52  ;;  %v843_v23 = vpop.f32.mrf.mxu0  ;;  %v861_v25 = vpop.f32.mrf.mxu1  ;;  %v899_v54 = vand.u32 2147483647, %v2408_v18  ;;  %v901_v41 = vand.u32 2147483648, %v2408_v18  ;;  %vm2478_vm9 = vmor %vm880_vm12, %vm881_vm13 }
 0x2bb   : > { %1831 = vpow2.f32 %v870_v16  ;;  %v877_v43 = vsub.f32 1.0, %v876_v55  ;;  %vm895_vm15 = vweird.f32 %v2408_v18  ;;  %v987_v27 = vand.u32 2147483647, %v2412_v21 }
 0x2bc   : > { %v968_v26 = vsub.f32 0.0, %v963_v22  ;;  %1833 = vrcp.f32 %v2412_v21  ;;  %vm2460_vm2 = vcmp.eq.f32.partialorder %v899_v54, 8.507059e+37  ;;  %v902_v5 = vor.u32 1.1754944e-38, %v901_v41  ;;  %v1704_v41 = vld [vmem:[#allocation7 + $0x164] sm:$0xf] }
 0x2bd   : > { %v878_v52 = vmul.f32 %v2415_v28, %v877_v43  ;;  %v2469_v6 = vor.u32 1.1754944e-38, %v989_v57 }
 0x2be   : > { %v1828_v24 = vpop.eup %1827  ;;  %v973_v29 = vmul.f32 1.442695, %v968_v26 }
 0x2bf   : > { %v2418_v31 = vadd.f32 1.0, %v1828_v24  ;;  %v879_v63 = vadd.f32 %v2415_v28, %v878_v52 }
 0x2c0   : > { %v2420_v34 = vpop.eup %1829  ;;  %1835 = vpow2.f32 %v973_v29 }
 0x2c1   : > { %v1832_v33 = vpop.eup %1831  ;;  %1837 = vrcp.f32 %v2418_v31  ;;  %v946_v20 = vpop.f32.mrf.mxu2  ;;  %v891_v37 = vmul.f32 %v2420_v34, %v2408_v18  ;;  %vm896_vm4 = vweird.f32 %v2420_v34  ;;  %v883_v22 = vsel %vm2478_vm9, %v2415_v28, %v879_v63 }
 0x2c2   : > { %v964_v36 = vpop.f32.mrf.mxu3  ;;  %v874_v17 = vadd.f32 1.0, %v1832_v33  ;;  %v2429_v39 = vpop.eup %1833  ;;  %vm998_vm10 = vweird.f32 %v2418_v31  ;;  %v1002_v23 = vand.u32 2147483647, %v2418_v31  ;;  %vm2494_vm8 = vmor %vm895_vm15, %vm896_vm4  ;;  %v1004_v26 = vand.u32 2147483648, %v2418_v31 }
 0x2c3   : > { %v892_v45 = vsub.f32 1.0, %v891_v37  ;;  %v979_v49 = vmul.f32 %v2429_v39, %v2412_v21  ;;  %vm984_vm5 = vweird.f32 %v2429_v39  ;;  %v888_v52 = vsel %vm2465_vm3, %v887_v35, %v883_v22  ;;  %v1623_v21 = vld [vmem:[#allocation7 + $0x148] sm:$0xf0] }
 0x2c4   : > { %1839 = vrcp.f32 %v874_v17  ;;  %v914_v2 = vand.u32 2147483647, %v874_v17  ;;  %v916_v9 = vand.u32 2147483648, %v874_v17  ;;  %vm910_vm7 = vweird.f32 %v874_v17  ;;  %vm2511_vm4 = vmor %vm983_vm14, %vm984_vm5 }
 0x2c5   : > { %v893_v30 = vmul.f32 %v2420_v34, %v892_v45  ;;  %v980_v11 = vsub.f32 1.0, %v979_v49  ;;  %vm2523_vm9 = vcmp.eq.f32.partialorder %v1002_v23, 8.507059e+37  ;;  %v1005_v49 = vor.u32 1.1754944e-38, %v1004_v26  ;;  %v1700_v23 = vld [vmem:[#allocation7 + $0x144] sm:$0xf] }
 0x2c6   : > { %v1836_v44 = vpop.eup %1835  ;;  %vm915_vm11 = vcmp.eq.f32.partialorder %v914_v2, 8.507059e+37  ;;  %v917_v28 = vor.u32 1.1754944e-38, %v916_v9  ;;  %v920_v4 = vmul.f32 %v888_v52, %v2436_v48  ;;  %v1702_v9 = vld [vmem:[#allocation7 + $0x154] sm:$0xf]  ;;  %vm988_vm5 = vcmp.eq.f32.partialorder %v987_v27, 8.507059e+37 }
 0x2c7   : > { %v2432_v47 = vpop.eup %1837  ;;  %v2443_v12 = vadd.f32 1.0, %v1836_v44  ;;  %v894_v10 = vadd.f32 %v2420_v34, %v893_v30  ;;  %v981_v15 = vmul.f32 %v2429_v39, %v980_v11  ;;  %v1639_v11 = vld [vmem:[#allocation7 + $0x168] sm:$0xf0] }
 0x2c8   : > { %v994_v51 = vmul.f32 %v2432_v47, %v2418_v31  ;;  %vm999_vm13 = vweird.f32 %v2432_v47  ;;  %v1647_v31 = vld [vmem:[#allocation7 + $0x178] sm:$0xf0] }
 0x2c9   : > { %1841 = vrcp.f32 %v2443_v12  ;;  %v898_v29 = vsel %vm2494_vm8, %v2420_v34, %v894_v10  ;;  %v1019_v33 = vand.u32 2147483648, %v2443_v12  ;;  %v982_v18 = vadd.f32 %v2429_v39, %v981_v15  ;;  %v1631_v10 = vld [vmem:[#allocation7 + $0x158] sm:$0xf0] }
 0x2ca   : > { %v1840_v59 = vpop.eup %1839  ;;  %v995_v61 = vsub.f32 1.0, %v994_v51  ;;  %v903_v44 = vsel %vm2460_vm2, %v902_v5, %v898_v29  ;;  %v945_v51 = vadd.f32 %v2410_v3, %v2427_v38  ;;  %vm1013_vm14 = vweird.f32 %v2443_v12 }
 0x2cb   : > { %v906_v62 = vmul.f32 %v1840_v59, %v874_v17  ;;  %vm911_vm6 = vweird.f32 %v1840_v59  ;;  %v1017_v17 = vand.u32 2147483647, %v2443_v12  ;;  %v1650_v30 = vor.u32 %v1706_v53, %v1647_v31  ;;  %v1692_v31 = vld [vmem:[#allocation7 + $0x104] sm:$0xf] }
 0x2cc   : > { %v996_v16 = vmul.f32 %v2432_v47, %v995_v61  ;;  %vm912_vm12 = vmor %vm910_vm7, %vm911_vm6  ;;  %v2537_v3 = vmul.f32 %v903_v44, %v2441_v50  ;;  %v1645_v61 = vld [vmem:[#allocation7 + $0x170] sm:$0xf]  ;;  %v1634_v22 = vor.u32 %v1702_v9, %v1631_v10  ;;  %v1697_v44 = vld [vmem:[#allocation7 + $0x124] sm:$0xf0] }
 0x2cd   : > { %v907_v58 = vsub.f32 1.0, %v906_v62  ;;  %vm2519_vm6 = vmor %vm998_vm10, %vm999_vm13  ;;  %vm1018_vm3 = vcmp.eq.f32.partialorder %v1017_v17, 8.507059e+37  ;;  %v1707_v62 = vld [vmem:[#allocation7 + $0x174] sm:$0xf0]  ;;  %1207 = vmatpush.bf16.msrb.mxu3 %v1650_v30  ;;  %v1696_v17 = vld [vmem:[#allocation7 + $0x124] sm:$0xf] }
 0x2ce   : > { %v997_v20 = vadd.f32 %v2432_v47, %v996_v16  ;;  %v1646_v2 = vor.u32 %v1707_v62, %v1645_v61  ;;  %v940_v16 = vadd.f32 %v2401_v42, %v2427_v38  ;;  %v1626_v42 = vor.u32 %v1700_v23, %v1623_v21 }
 0x2cf   : > { %v1842_v8 = vpop.eup %1841  ;;  %v908_v13 = vmul.f32 %v1840_v59, %v907_v58  ;;  %v1642_v58 = vor.u32 %v1704_v41, %v1639_v11  ;;  %v1591_v41 = vld [vmem:[#allocation7 + $0x108] sm:$0xf0] }
 0x2d0   : > { %v1009_v19 = vmul.f32 %v1842_v8, %v2443_v12  ;;  %vm1014_vm15 = vweird.f32 %v1842_v8  ;;  %v986_v12 = vsel %vm2511_vm4, %v2429_v39, %v982_v18  ;;  %v942_v39 = vadd.f32 %v2403_v1, %v2427_v38  ;;  %1191 = vmatpush.bf16.msrb.mxu2 %v1646_v2  ;;  %v1629_v38 = vld [vmem:[#allocation7 + $0x150] sm:$0xf] }
 0x2d1   : > { %v909_v25 = vadd.f32 %v1840_v59, %v908_v13  ;;  %vm1015_vm2 = vmor %vm1013_vm14, %vm1014_vm15  ;;  %v1026_v13 = vpack.c.bf16 %v2537_v3, %v920_v4  ;;  %v991_v15 = vsel %vm988_vm5, %v2469_v6, %v986_v12  ;;  %1208 = vmatpush.bf16.msrb.mxu3 %v1642_v58  ;;  %v1851_v6 = vld [vmem:[#allocation5] sm:$0xff]  ;;  %v1630_v26 = vor.u32 %v1703_v7, %v1629_v38  ;;  %v1613_v18 = vld [vmem:[#allocation7 + $0x130] sm:$0xf] }
 0x2d2   : > { %v1010_v24 = vsub.f32 1.0, %v1009_v19  ;;  %v1023_v27 = vmul.f32 %v991_v15, %v940_v16 }
 0x2d3   : > { %v913_v55 = vsel %vm912_vm12, %v1840_v59, %v909_v25  ;;  %v1020_v59 = vor.u32 1.1754944e-38, %v1019_v33  ;;  %v1615_v33 = vld [vmem:[#allocation7 + $0x138] sm:$0xf0] }
 0x2d4   : > { %v918_v36 = vsel %vm915_vm11, %v917_v28, %v913_v55  ;;  %v1011_v37 = vmul.f32 %v1842_v8, %v1010_v24  ;;  %v1621_v24 = vld [vmem:[#allocation7 + $0x140] sm:$0xf]  ;;  %v1701_v28 = vld [vmem:[#allocation7 + $0x144] sm:$0xf0]  ;;  %v1698_v55 = vld [vmem:[#allocation7 + $0x134] sm:$0xf] }
 0x2d5   : > { %v922_v43 = vmul.f32 %v918_v36, %v842_v60  ;;  %v1001_v60 = vsel %vm2519_vm6, %v2432_v47, %v997_v20  ;;  %v1637_v47 = vld [vmem:[#allocation7 + $0x160] sm:$0xf]  ;;  %1209 = vmatpush.bf16.msrb.mxu3 %v1634_v22  ;;  %v1622_v29 = vor.u32 %v1701_v28, %v1621_v24  ;;  %v1618_v20 = vor.u32 %v1698_v55, %v1615_v33  ;;  %v1699_v36 = vld [vmem:[#allocation7 + $0x134] sm:$0xf0] }
 0x2d6   : > { %v1012_v54 = vadd.f32 %v1842_v8, %v1011_v37  ;;  %v1006_v5 = vsel %vm2523_vm9, %v1005_v49, %v1001_v60  ;;  %v1614_v37 = vor.u32 %v1699_v36, %v1613_v18  ;;  %v1599_v49 = vld [vmem:[#allocation7 + $0x118] sm:$0xf0]  ;;  %v1693_v60 = vld [vmem:[#allocation7 + $0x104] sm:$0xf0] }
 0x2d7   : > { %v1028_v57 = vpack.c.bf16 %v922_v43, %v922_v43  ;;  %v2554_v19 = vmul.f32 %v1006_v5, %v942_v39  ;;  %v1605_v43 = vld [vmem:[#allocation7 + $0x120] sm:$0xf]  ;;  %v1602_v52 = vor.u32 %v1694_v46, %v1599_v49 }
 0x2d8   : > { %v1016_v35 = vsel %vm1015_vm2, %v1842_v8, %v1012_v54  ;;  %v1705_v8 = vld [vmem:[#allocation7 + $0x164] sm:$0xf0]  ;;  %v1606_v45 = vor.u32 %v1697_v44, %v1605_v43  ;;  %v1695_v54 = vld [vmem:[#allocation7 + $0x114] sm:$0xf0] }
 0x2d9   : > { %v1033_v63 = vsel %vm307_vm0, %v1028_v57, 0  ;;  %v1021_v0 = vsel %vm1018_vm3, %v1020_v59, %v1016_v35  ;;  %v1638_v48 = vor.u32 %v1705_v8, %v1637_v47  ;;  %v1027_v25 = vpack.c.bf16 %v2554_v19, %v1023_v27  ;;  %1210 = vmatpush.bf16.msrb.mxu3 %v1626_v42  ;;  %v1589_v57 = vld [vmem:[#allocation7 + $0x100] sm:$0xf] }
 0x2da   : > { %1044 = vmatpush.bf16.msrb.mxu0 %v1033_v63  ;;  %v1025_v50 = vmul.f32 %v1021_v0, %v945_v51  ;;  %v1597_v51 = vld [vmem:[#allocation7 + $0x110] sm:$0xf]  ;;  %v1594_v59 = vor.u32 %v1692_v31, %v1591_v41 }
 0x2db   : > { %1192 = vmatpush.bf16.msrb.mxu2 %v1638_v48  ;;  %v1598_v53 = vor.u32 %v1695_v54, %v1597_v51 }
 0x2dc   : > { %v1029_v14 = vpack.c.bf16 %v1025_v50, %v1025_v50 }
 0x2dd   : > { %1211 = vmatpush.bf16.msrb.mxu3 %v1618_v20 }
 0x2de   : > { %1045 = vmatpush.bf16.msrb.mxu0 %v1026_v13  ;;  %v1036_v1 = vsel %vm307_vm0, %v1029_v14, 0 }
 0x2df   : > { %1062 = vmatpush.bf16.msrb.mxu1 %v1036_v1  ;;  %1193 = vmatpush.bf16.msrb.mxu2 %v1630_v26  ;;  %v2564_v1 = vld [vmem:[#allocation8 + $0x4] sm:$0x3] }
 0x2e0   : > { %v1098_v23 = vperm.slane %v2564_v1, 1 }
 0x2e1   : > { %1583 = vmatmul.msk.bf16.vlgmr.msrb.gmra.mxu0 %vm300_vm1, %v1851_v6 }
 0x2e2   : > { %1250 = vmatpush.bf16.msra.mxu0 %v1646_v2 }
 0x2e3   : > { %1063 = vmatpush.bf16.msrb.mxu1 %v1027_v25  ;;  %1194 = vmatpush.bf16.msrb.mxu2 %v1622_v29 }
 0x2e6   : > { %1251 = vmatpush.bf16.msra.mxu0 %v1638_v48  ;;  %1585 = vmatmul.msk.bf16.vlgmr.msrb.gmra.mxu1 %vm300_vm1, %v1851_v6 }
 0x2e7   : > { %1266 = vmatpush.bf16.msra.mxu1 %v1650_v30  ;;  %1195 = vmatpush.bf16.msrb.mxu2 %v1614_v37  ;;  %v1590_v30 = vor.u32 %v1693_v60, %v1589_v57 }
 0x2ea   : > { %1252 = vmatpush.bf16.msra.mxu0 %v1630_v26 }
 0x2eb   : > { %1267 = vmatpush.bf16.msra.mxu1 %v1642_v58  ;;  %1196 = vmatpush.bf16.msrb.mxu2 %v1606_v45 }
 0x2ee   : > { %1253 = vmatpush.bf16.msra.mxu0 %v1622_v29 }
 0x2ef   : > { %1268 = vmatpush.bf16.msra.mxu1 %v1634_v22  ;;  %1197 = vmatpush.bf16.msrb.mxu2 %v1598_v53 }
 0x2f1   : > { %1584 = vmatmul.msk.bf16.gmra.mxu0 %vm300_vm1, %v2221_v40 }
 0x2f2   : > { %1254 = vmatpush.bf16.msra.mxu0 %v1614_v37 }
 0x2f3   : > { %1269 = vmatpush.bf16.msra.mxu1 %v1626_v42  ;;  %1198 = vmatpush.bf16.msrb.mxu2 %v1590_v30 }
 0x2f6   : > { %1586 = vmatmul.msk.bf16.gmra.mxu1 %vm300_vm1, %v2221_v40  ;;  %v1607_v40 = vld [vmem:[#allocation7 + $0x128] sm:$0xf0]  ;;  %1255 = vmatpush.bf16.msra.mxu0 %v1606_v45 }
 0x2f7   : > { %1270 = vmatpush.bf16.msra.mxu1 %v1618_v20  ;;  %v1610_v34 = vor.u32 %v1696_v17, %v1607_v40 }
 0x2f9   : > { %1212 = vmatpush.bf16.msrb.mxu3 %v1610_v34 }
 0x2fa   : > { %1256 = vmatpush.bf16.msra.mxu0 %v1598_v53  ;;  %v1097_v53 = vperm.slane %v2564_v1, 0 }
 0x2fb   : > { %1271 = vmatpush.bf16.msra.mxu1 %v1610_v34 }
 0x2fd   : > { %1213 = vmatpush.bf16.msrb.mxu3 %v1602_v52 }
 0x2fe   : > { %1257 = vmatpush.bf16.msra.mxu0 %v1590_v30 }
 0x2ff   : > { %1272 = vmatpush.bf16.msra.mxu1 %v1602_v52 }
 0x301   : > { %1214 = vmatpush.bf16.msrb.mxu3 %v1594_v59 }
 0x303   : > { %1273 = vmatpush.bf16.msra.mxu1 %v1594_v59 }
 0x35e   : > { %v1047_v11 = vpop.f32.mrf.mxu0 }
 0x363   : > { %v1065_v35 = vpop.f32.mrf.mxu1 }
 0x364   : > { %v1074_v61 = vpack.c.bf16 %v1065_v35, %v1047_v11 }
 0x366   : > { %v1049_v12 = vpop.f32.mrf.mxu0  ;;  %v1104_v0 = vunpack.c.l.b16 %v1074_v61  ;;  %v1243_v58 = vunpack.c.h.b16 %v1074_v61  ;;  %v1031_v61 = vmax.f32 %v2362_v32, %v2554_v19  ;;  %v1030_v19 = vmax.f32 %v2387_v56, %v2537_v3 }
 0x36b   : > { %v1067_v62 = vpop.f32.mrf.mxu1 }
 0x36c   : > { %v1075_v63 = vpack.c.bf16 %v1067_v62, %v1049_v12 }
 0x36e   : > { %v1105_v2 = vunpack.c.l.b16 %v1075_v63  ;;  %v1244_v47 = vunpack.c.h.b16 %v1075_v63  ;;  %v1052_v4 = vpop.f32.mrf.mxu0 }
 0x370   : > { %v1107_v50 = vpack.c.b16 %v1105_v2, %v1104_v0  ;;  %v1246_v5 = vpack.c.b16 %v1244_v47, %v1243_v58 }
 0x372   : > { %1215 = vmatmul.bf16.vlgmr.msrb.gmra.mxu3 %v1107_v50  ;;  %1274 = vmatmul.bf16.vlgmr.msra.gmra.mxu1 %v1246_v5 }
 0x373   : > { %1199 = vmatmul.bf16.vlgmr.msrb.gmra.mxu2 %v1107_v50  ;;  %1258 = vmatmul.bf16.vlgmr.msra.gmra.mxu0 %v1246_v5  ;;  %v1070_v9 = vpop.f32.mrf.mxu1 }
 0x374   : > { %v1076_v10 = vpack.c.bf16 %v1070_v9, %v1052_v4 }
 0x376   : > { %v1054_v8 = vpop.f32.mrf.mxu0  ;;  %v1106_v39 = vunpack.c.l.b16 %v1076_v10  ;;  %v1245_v13 = vunpack.c.h.b16 %v1076_v10 }
 0x378   : > { %v1108_v15 = vpack.c.b16 %v1106_v39, %v1106_v39  ;;  %v1247_v48 = vpack.c.b16 %v1245_v13, %v1245_v13 }
 0x37b   : > { %v1072_v14 = vpop.f32.mrf.mxu1 }
 0x382   : > { %1219 = vmatmul.bf16.gmra.mxu3 %v1108_v15  ;;  %1278 = vmatmul.bf16.gmra.mxu1 %v1247_v48 }
 0x383   : > { %1203 = vmatmul.bf16.gmra.mxu2 %v1108_v15  ;;  %1262 = vmatmul.bf16.gmra.mxu0 %v1247_v48 }
 0x3ef   : > { %v1275_v16 = vpop.f32.mrf.mxu1 }
 0x3f0   : > { %v1259_v22 = vpop.f32.mrf.mxu0 }
 0x3f5   : > { %v1216_v21 = vpop.f32.mrf.mxu3 }
 0x3f6   : > { %v1200_v27 = vpop.f32.mrf.mxu2 }
 0x3f7   : > { %v1276_v25 = vpop.f32.mrf.mxu1 }
 0x3f8   : > { %v1277_v6 = vadd.f32 %v1276_v25, %v1098_v23  ;;  %v1260_v42 = vpop.f32.mrf.mxu0 }
 0x3f9   : > { %v1261_v11 = vadd.f32 %v1260_v42, %v1097_v53 }
 0x3fa   : > { %v1282_v38 = vsub.f32 0.0, %v1277_v6 }
 0x3fc   : > { %v1283_v7 = vmul.f32 1.442695, %v1282_v38 }
 0x3fd   : > { %v1217_v26 = vpop.f32.mrf.mxu3 }
 0x3fe   : > { %1843 = vpow2.f32 %v1283_v7  ;;  %v1218_v24 = vadd.f32 %v1217_v26, %v1098_v23  ;;  %v1201_v28 = vpop.f32.mrf.mxu2 }
 0x3ff   : > { %v1279_v29 = vpop.f32.mrf.mxu1  ;;  %v1202_v5 = vadd.f32 %v1201_v28, %v1097_v53 }
 0x400   : > { %v1223_v55 = vsub.f32 0.0, %v1218_v24  ;;  %v1263_v33 = vpop.f32.mrf.mxu0 }
 0x402   : > { %v1224_v18 = vmul.f32 1.442695, %v1223_v55 }
 0x404   : > { %v1844_v20 = vpop.eup %1843  ;;  %1845 = vpow2.f32 %v1224_v18 }
 0x405   : > { %v1285_v36 = vadd.f32 1.0, %v1844_v20  ;;  %v1220_v37 = vpop.f32.mrf.mxu3 }
 0x406   : > { %v1204_v17 = vpop.f32.mrf.mxu2 }
 0x407   : > { %1847 = vrcp.f32 %v1285_v36  ;;  %v1280_v40 = vpop.f32.mrf.mxu1  ;;  %v1297_v54 = vand.u32 2147483648, %v1285_v36  ;;  %v1295_v41 = vand.u32 2147483647, %v1285_v36  ;;  %vm1291_vm1 = vweird.f32 %v1285_v36 }
 0x408   : > { %v1264_v34 = vpop.f32.mrf.mxu0 }
 0x409   : > { %v1298_v30 = vor.u32 1.1754944e-38, %v1297_v54  ;;  %vm1296_vm7 = vcmp.eq.f32.partialorder %v1295_v41, 8.507059e+37 }
 0x40a   : > { %v1846_v43 = vpop.eup %1845 }
 0x40b   : > { %v1226_v44 = vadd.f32 1.0, %v1846_v43 }
 0x40d   : > { %v1848_v45 = vpop.eup %1847  ;;  %1849 = vrcp.f32 %v1226_v44  ;;  %v1221_v46 = vpop.f32.mrf.mxu3  ;;  %v1238_v63 = vand.u32 2147483648, %v1226_v44  ;;  %v1236_v2 = vand.u32 2147483647, %v1226_v44  ;;  %vm1232_vm8 = vweird.f32 %v1226_v44 }
 0x40e   : > { %v1287_v49 = vmul.f32 %v1848_v45, %v1285_v36  ;;  %v1205_v51 = vpop.f32.mrf.mxu2  ;;  %vm1292_vm0 = vweird.f32 %v1848_v45 }
 0x40f   : > { %vm1293_vm10 = vmor %vm1291_vm1, %vm1292_vm0  ;;  %v1239_v50 = vor.u32 1.1754944e-38, %v1238_v63  ;;  %vm1237_vm13 = vcmp.eq.f32.partialorder %v1236_v2, 8.507059e+37 }
 0x410   : > { %v1288_v52 = vsub.f32 1.0, %v1287_v49 }
 0x412   : > { %v1289_v31 = vmul.f32 %v1848_v45, %v1288_v52 }
 0x413   : > { %v1850_v57 = vpop.eup %1849 }
 0x414   : > { %v1290_v59 = vadd.f32 %v1848_v45, %v1289_v31  ;;  %v1228_v60 = vmul.f32 %v1850_v57, %v1226_v44  ;;  %vm1233_vm11 = vweird.f32 %v1850_v57 }
 0x415   : > { %vm1234_vm12 = vmor %vm1232_vm8, %vm1233_vm11 }
 0x416   : > { %v1294_v35 = vsel %vm1293_vm10, %v1848_v45, %v1290_v59  ;;  %v1229_v12 = vsub.f32 1.0, %v1228_v60 }
 0x417   : > { %v1299_v62 = vsel %vm1296_vm7, %v1298_v30, %v1294_v35 }
 0x418   : > { %v1301_v0 = vmul.f32 %v1299_v62, %v1261_v11  ;;  %v1230_v58 = vmul.f32 %v1850_v57, %v1229_v12 }
 0x41a   : > { %v1303_v47 = vmax.f32 %v1031_v61, %v1301_v0  ;;  %v1231_v4 = vadd.f32 %v1850_v57, %v1230_v58 }
 0x41c   : > { %v1235_v9 = vsel %vm1234_vm12, %v1850_v57, %v1231_v4  ;;  %1305 = vst [vmem:[%s267_s27 + $0x8] sm:$0xff] %v1303_v47 }
 0x41d   : > { %v1240_v32 = vsel %vm1237_vm13, %v1239_v50, %v1235_v9 }
 0x41e   : > { %v1242_v10 = vmul.f32 %v1240_v32, %v1202_v5 }
 0x420   : > { %v1302_v8 = vmax.f32 %v1030_v19, %v1242_v10 }
 0x422   : > { %1304 = vst [vmem:[%s267_s27] sm:$0xff] %v1302_v8 }
 0x423   : > { %1999 = shalt.err (!%p1996_p10)
}
 0x424   : > { %1725 = dma.vmem_to_hbm [thread:$0]  (%p2169_p7), %s1321_s19, 256, %s1323_s5, %s1307_s29  }
 0x425 PF: > { %s1334_s24 = sand.u32 1, %s2034_s15   ;;  %p2651_p12 = scmp.ge.s32.totalorder %s2046_s18, 2 }
 0x426   : > { %s1335_s30 = scalar_lea.sflag [#allocation4], %s1334_s24 }
 0x427   : > { %p1742_p13 = pnand %p2651_p12, %p2118_p6 }
 0x429   : > { %p1743_p0 = pneg %p1742_p13 }
 0x42b   : > { %2029 = dma.done.wait (%p1743_p0), %s1335_s30, 256  }
 0x42c   : > { %2031 = vsyncadd (%p1743_p0), %s1335_s30, 4294967040  ;;  %p19_p3 = scmp.ge.s32.totalorder %s2155_s28, 4   ;;  %s2652_s15 = smov %s2038_s16 }
 0x42d   : > { %s2653_s16 = smov %s2042_s17  ;;  %s2654_s17 = smov %s2165_s6 }
 0x42e   : > { %s2655_s18 = smov %s2155_s28  ;;  %21 = sbr.rel (!%p19_p3) target bundleno = 7 (0x7), region = 97 }
 0x433   :  { %1341 = vsyncpa [#allocation3], 1 }
 0x434   :  { %1343 = vsyncpa [#allocation3 + $0x1], 1 }
 0x435   :  { %1344 = vsyncpa [#allocation6], 1 }
 0x436   :  { %1345 = vsyncpa [#allocation9], 1 }
 0x437   :  { %1346 = vsyncpa [#allocation4], 1 }
 0x438   :  { %1348 = vsyncpa [#allocation4 + $0x1], 1 }

</bundles_post_ra>
